<compile_context>
chip_gen: v7x
topology: tpu7x:2x2x1
jax: 0.10.0
libtpu: 0.0.40
codegen_flags: <defaults>
</compile_context>

<pallas_src>
import functools

import jax
import jax.numpy as jnp
from jax.experimental import pallas as pl
from jax.experimental.pallas import tpu as pltpu

LANE = 128


def _round_up(n, m):
    return ((n + m - 1) // m) * m


def _vae_kernel(x_ref, eps_ref,
                w1_ref, b1_ref,
                wms_ref, bms_ref,
                w2_ref, b2_ref,
                w3_ref, b3_ref,
                xrec_ref, ms_ref, *, z_pad):
    # ---- encoder ----
    x = x_ref[...]  # bf16 (tm, d_pad)
    h = jnp.dot(x, w1_ref[...], preferred_element_type=jnp.float32) + b1_ref[...]
    h = jnp.maximum(h, 0.0)  # ReLU (f32)

    # fused mu/sigma head: one MXU pass instead of two
    ms = jnp.dot(h.astype(jnp.bfloat16), wms_ref[...],
                 preferred_element_type=jnp.float32) + bms_ref[...]
    ms_ref[...] = ms  # single lane-dense (tm, 2*z_pad) output slab

    mu = ms[:, :z_pad]        # tile-aligned slice (lanes 0:128)
    sigma = ms[:, z_pad:]     # tile-aligned slice (lanes 128:256)

    # ---- reparameterization (f32) ----
    z = mu + sigma * eps_ref[...]

    # ---- decoder ----
    h2 = jnp.dot(z.astype(jnp.bfloat16), w2_ref[...],
                 preferred_element_type=jnp.float32) + b2_ref[...]
    h2 = jnp.maximum(h2, 0.0)  # ReLU
    logits = jnp.dot(h2.astype(jnp.bfloat16), w3_ref[...],
                     preferred_element_type=jnp.float32) + b3_ref[...]
    xrec_ref[...] = jax.nn.sigmoid(logits)


def init_params(key, input_dim, h_dim=200, z_dim=20):
    """nn.Linear-style init (uniform +-1/sqrt(fan_in)); weights stored as (in, out)."""
    def linear(key, fan_in, fan_out):
        kw, kb = jax.random.split(key)
        bound = 1.0 / jnp.sqrt(jnp.float32(fan_in))
        w = jax.random.uniform(kw, (fan_in, fan_out), jnp.float32, -bound, bound)
        b = jax.random.uniform(kb, (1, fan_out), jnp.float32, -bound, bound)
        return w, b

    k1, k2, k3, k4, k5 = jax.random.split(key, 5)
    w1, b1 = linear(k1, input_dim, h_dim)     # img_2_hid
    wmu, bmu = linear(k2, h_dim, z_dim)       # hid_2_mu
    wsig, bsig = linear(k3, h_dim, z_dim)     # hid_2_sigma
    w2, b2 = linear(k4, z_dim, h_dim)         # z_2_hid
    w3, b3 = linear(k5, h_dim, input_dim)     # hid_2_img
    return {"w1": w1, "b1": b1, "wmu": wmu, "bmu": bmu, "wsig": wsig, "bsig": bsig,
            "w2": w2, "b2": b2, "w3": w3, "b3": b3}


def pack_params(p, input_dim, h_dim, z_dim):
    """Zero-pad every feature dim to a lane multiple of 128, fuse mu/sigma heads,
    and cast matmul weights to bf16 (biases stay f32)."""
    d_p = _round_up(input_dim, LANE)
    h_p = _round_up(h_dim, LANE)
    z_p = _round_up(z_dim, LANE)

    def pad2(a, r, c):
        return jnp.zeros((r, c), jnp.float32).at[:a.shape[0], :a.shape[1]].set(a)

    w1 = pad2(p["w1"], d_p, h_p).astype(jnp.bfloat16)
    b1 = pad2(p["b1"], 1, h_p)

    # Fused mu/sigma head: mu -> lanes [0, z_p), sigma -> lanes [z_p, 2*z_p).
    wms = jnp.zeros((h_p, 2 * z_p), jnp.float32)
    wms = wms.at[:h_dim, :z_dim].set(p["wmu"])
    wms = wms.at[:h_dim, z_p:z_p + z_dim].set(p["wsig"])
    bms = jnp.zeros((1, 2 * z_p), jnp.float32)
    bms = bms.at[:, :z_dim].set(p["bmu"][0])
    bms = bms.at[:, z_p:z_p + z_dim].set(p["bsig"][0])

    w2 = pad2(p["w2"], z_p, h_p).astype(jnp.bfloat16)
    b2 = pad2(p["b2"], 1, h_p)
    w3 = pad2(p["w3"], h_p, d_p).astype(jnp.bfloat16)  # padded cols stay exactly zero
    b3 = pad2(p["b3"], 1, d_p)

    return {"w1": w1, "b1": b1, "wms": wms.astype(jnp.bfloat16), "bms": bms,
            "w2": w2, "b2": b2, "w3": w3, "b3": b3}


def vae_forward(x, eps, packed, *, input_dim, h_dim, z_dim, row_tile=128):
    """VAE forward in a single batched Pallas kernel.

    x: (B, input_dim) f32, eps: (B, z_dim) f32 standard-normal noise.
    Returns (x_reconstructed, mu, sigma) at the logical (unpadded) shapes.
    """
    B = x.shape[0]
    d_p = _round_up(input_dim, LANE)
    h_p = _round_up(h_dim, LANE)
    z_p = _round_up(z_dim, LANE)

    tm = min(row_tile, _round_up(B, 8))
    b_p = _round_up(B, tm)

    # Pad batch + feature dims once in the wrapper; matmul operands as bf16.
    x_p = jnp.zeros((b_p, d_p), jnp.bfloat16).at[:B, :input_dim].set(
        x.astype(jnp.bfloat16))
    eps_p = jnp.zeros((b_p, z_p), jnp.float32).at[:B, :z_dim].set(eps)

    grid = (b_p // tm,)
    row_map = lambda i: (i, 0)
    const_map = lambda i: (0, 0)

    in_specs = [
        pl.BlockSpec((tm, d_p), row_map),          # x
        pl.BlockSpec((tm, z_p), row_map),          # eps
        pl.BlockSpec((d_p, h_p), const_map),       # w1 (resident)
        pl.BlockSpec((1, h_p), const_map),         # b1
        pl.BlockSpec((h_p, 2 * z_p), const_map),   # wms (fused mu/sigma)
        pl.BlockSpec((1, 2 * z_p), const_map),     # bms
        pl.BlockSpec((z_p, h_p), const_map),       # w2
        pl.BlockSpec((1, h_p), const_map),         # b2
        pl.BlockSpec((h_p, d_p), const_map),       # w3
        pl.BlockSpec((1, d_p), const_map),         # b3
    ]
    out_specs = (
        pl.BlockSpec((tm, d_p), row_map),          # x_reconstructed (padded)
        pl.BlockSpec((tm, 2 * z_p), row_map),      # [mu | sigma] slab
    )
    out_shapes = (
        jax.ShapeDtypeStruct((b_p, d_p), jnp.float32),
        jax.ShapeDtypeStruct((b_p, 2 * z_p), jnp.float32),
    )

    flops = 2 * b_p * (d_p * h_p + h_p * (2 * z_p) + z_p * h_p + h_p * d_p)
    weight_bytes = sum(int(v.size) * v.dtype.itemsize for v in packed.values())
    bytes_accessed = (x_p.size * 2 + eps_p.size * 4 + weight_bytes
                      + b_p * d_p * 4 + b_p * 2 * z_p * 4)

    xrec_p, ms = pl.pallas_call(
        functools.partial(_vae_kernel, z_pad=z_p),
        out_shape=out_shapes,
        grid=grid,
        in_specs=in_specs,
        out_specs=out_specs,
        compiler_params=pltpu.CompilerParams(
            dimension_semantics=("parallel",)),
        cost_estimate=pl.CostEstimate(
            flops=flops,
            transcendentals=b_p * d_p,
            bytes_accessed=bytes_accessed),
    )(x_p, eps_p,
      packed["w1"], packed["b1"], packed["wms"], packed["bms"],
      packed["w2"], packed["b2"], packed["w3"], packed["b3"])

    x_rec = xrec_p[:B, :input_dim]
    mu = ms[:B, :z_dim]
    sigma = ms[:B, z_p:z_p + z_dim]
    return x_rec, mu, sigma


def vae_reference(x, eps, p):
    """Pure-JAX f32 reference matching the PyTorch module."""
    h = jnp.maximum(x @ p["w1"] + p["b1"], 0.0)
    mu = h @ p["wmu"] + p["bmu"]
    sigma = h @ p["wsig"] + p["bsig"]
    z = mu + sigma * eps
    h2 = jnp.maximum(z @ p["w2"] + p["b2"], 0.0)
    xrec = jax.nn.sigmoid(h2 @ p["w3"] + p["b3"])
    return xrec, mu, sigma


if __name__ == "__main__":
    # Flattened 8x8 "image", module-default hidden/latent sizes, a couple of row tiles.
    B = 256
    INPUT_DIM = 64
    H_DIM = 200
    Z_DIM = 20

    root = jax.random.PRNGKey(0)
    k_params, k_x, k_eps = jax.random.split(root, 3)

    params = init_params(k_params, INPUT_DIM, H_DIM, Z_DIM)
    packed = pack_params(params, INPUT_DIM, H_DIM, Z_DIM)

    x = jax.random.uniform(k_x, (B, INPUT_DIM), jnp.float32)
    # TODO(synk): torch.randn_like(sigma) is generated host-side and passed in as eps.
    eps = jax.random.normal(k_eps, (B, Z_DIM), jnp.float32)

    fwd = jax.jit(functools.partial(
        vae_forward, input_dim=INPUT_DIM, h_dim=H_DIM, z_dim=Z_DIM))
    xrec, mu, sigma = jax.block_until_ready(fwd(x, eps, packed))

    xrec_ref, mu_ref, sigma_ref = vae_reference(x, eps, params)
    assert xrec.shape == (B, INPUT_DIM)
    assert mu.shape == (B, Z_DIM) and sigma.shape == (B, Z_DIM)
    # bf16 matmul operands (f32 accumulation) -> loosened tolerance vs f32 reference.
    assert jnp.allclose(xrec, xrec_ref, atol=3e-2, rtol=3e-2)
    assert jnp.allclose(mu, mu_ref, atol=3e-2, rtol=3e-2)
    assert jnp.allclose(sigma, sigma_ref, atol=3e-2, rtol=3e-2)

    print("KERNEL_OK")
</pallas_src>

<mosaic_0001>
module attributes {stable_mosaic.version = 11 : i64} {
  func.func @_vae_kernel(%arg0: i32, %arg1: memref<128x128xbf16, #tpu.memory_space<vmem>>, %arg2: memref<128x128xf32, #tpu.memory_space<vmem>>, %arg3: memref<128x256xbf16, #tpu.memory_space<vmem>>, %arg4: memref<1x256xf32, #tpu.memory_space<vmem>>, %arg5: memref<256x256xbf16, #tpu.memory_space<vmem>>, %arg6: memref<1x256xf32, #tpu.memory_space<vmem>>, %arg7: memref<128x256xbf16, #tpu.memory_space<vmem>>, %arg8: memref<1x256xf32, #tpu.memory_space<vmem>>, %arg9: memref<256x128xbf16, #tpu.memory_space<vmem>>, %arg10: memref<1x128xf32, #tpu.memory_space<vmem>>, %arg11: memref<128x128xf32, #tpu.memory_space<vmem>>, %arg12: memref<128x256xf32, #tpu.memory_space<vmem>>) attributes {dimension_semantics = [#tpu.dimension_semantics<parallel>], iteration_bounds = array<i64: 2>, scalar_prefetch = 0 : i64, scratch_operands = 0 : i64, tpu.core_type = #tpu.core_type<tc>, window_params = [{transform_indices = @transform_0, window_bounds = array<i64: 128, 128>}, {transform_indices = @transform_1, window_bounds = array<i64: 128, 128>}, {pipeline_mode = #tpu.pipeline_mode<synchronous>, transform_indices = @transform_2, window_bounds = array<i64: 128, 256>}, {pipeline_mode = #tpu.pipeline_mode<synchronous>, transform_indices = @transform_3, window_bounds = array<i64: 1, 256>}, {pipeline_mode = #tpu.pipeline_mode<synchronous>, transform_indices = @transform_4, window_bounds = array<i64: 256, 256>}, {pipeline_mode = #tpu.pipeline_mode<synchronous>, transform_indices = @transform_5, window_bounds = array<i64: 1, 256>}, {pipeline_mode = #tpu.pipeline_mode<synchronous>, transform_indices = @transform_6, window_bounds = array<i64: 128, 256>}, {pipeline_mode = #tpu.pipeline_mode<synchronous>, transform_indices = @transform_7, window_bounds = array<i64: 1, 256>}, {pipeline_mode = #tpu.pipeline_mode<synchronous>, transform_indices = @transform_8, window_bounds = array<i64: 256, 128>}, {pipeline_mode = #tpu.pipeline_mode<synchronous>, transform_indices = @transform_9, window_bounds = array<i64: 1, 128>}, {transform_indices = @transform_10, window_bounds = array<i64: 128, 128>}, {transform_indices = @transform_11, window_bounds = array<i64: 128, 256>}]} {
    %c0 = arith.constant 0 : index
    %c0_0 = arith.constant 0 : index
    %0 = vector.load %arg1[%c0, %c0_0] : memref<128x128xbf16, #tpu.memory_space<vmem>>, vector<128x128xbf16>
    %c0_1 = arith.constant 0 : index
    %c0_2 = arith.constant 0 : index
    %1 = vector.load %arg3[%c0_1, %c0_2] : memref<128x256xbf16, #tpu.memory_space<vmem>>, vector<128x256xbf16>
    %cst = arith.constant dense<0.000000e+00> : vector<128x256xf32>
    %2 = tpu.matmul %0, %1, %cst {dimension_numbers = #tpu.dot_dimension_numbers<[1], [0], [0], [1], [0, 0, 1, 1], [], []>} : vector<128x128xbf16>, vector<128x256xbf16>, vector<128x256xf32> -> vector<128x256xf32>
    %c0_3 = arith.constant 0 : index
    %c0_4 = arith.constant 0 : index
    %3 = vector.load %arg4[%c0_3, %c0_4] : memref<1x256xf32, #tpu.memory_space<vmem>>, vector<1x256xf32>
    %4 = vector.broadcast %3 : vector<1x256xf32> to vector<128x256xf32>
    %5 = arith.addf %2, %4 : vector<128x256xf32>
    %cst_5 = arith.constant 0.000000e+00 : f32
    %6 = vector.broadcast %cst_5 : f32 to vector<128x256xf32>
    %7 = arith.maximumf %5, %6 : vector<128x256xf32>
    %8 = arith.truncf %7 : vector<128x256xf32> to vector<128x256xbf16>
    %c0_6 = arith.constant 0 : index
    %c0_7 = arith.constant 0 : index
    %9 = vector.load %arg5[%c0_6, %c0_7] : memref<256x256xbf16, #tpu.memory_space<vmem>>, vector<256x256xbf16>
    %cst_8 = arith.constant dense<0.000000e+00> : vector<128x256xf32>
    %10 = tpu.matmul %8, %9, %cst_8 {dimension_numbers = #tpu.dot_dimension_numbers<[1], [0], [0], [1], [0, 0, 1, 1], [], []>} : vector<128x256xbf16>, vector<256x256xbf16>, vector<128x256xf32> -> vector<128x256xf32>
    %c0_9 = arith.constant 0 : index
    %c0_10 = arith.constant 0 : index
    %11 = vector.load %arg6[%c0_9, %c0_10] : memref<1x256xf32, #tpu.memory_space<vmem>>, vector<1x256xf32>
    %12 = vector.broadcast %11 : vector<1x256xf32> to vector<128x256xf32>
    %13 = arith.addf %10, %12 : vector<128x256xf32>
    %c0_11 = arith.constant 0 : index
    %c0_12 = arith.constant 0 : index
    %14 = vector.load %arg12[%c0_11, %c0_12] : memref<128x256xf32, #tpu.memory_space<vmem>>, vector<128x256xf32>
    tpu.vector_store %arg12[%c0_11, %c0_12], %13 {strides = array<i32>} : memref<128x256xf32, #tpu.memory_space<vmem>>, vector<128x256xf32>,
    %15 = vector.extract_strided_slice %13 {offsets = [0, 0], sizes = [128, 128], strides = [1, 1]} : vector<128x256xf32> to vector<128x128xf32>
    %16 = vector.extract_strided_slice %13 {offsets = [0, 128], sizes = [128, 128], strides = [1, 1]} : vector<128x256xf32> to vector<128x128xf32>
    %c0_13 = arith.constant 0 : index
    %c0_14 = arith.constant 0 : index
    %17 = vector.load %arg2[%c0_13, %c0_14] : memref<128x128xf32, #tpu.memory_space<vmem>>, vector<128x128xf32>
    %18 = arith.mulf %16, %17 : vector<128x128xf32>
    %19 = arith.addf %15, %18 : vector<128x128xf32>
    %20 = arith.truncf %19 : vector<128x128xf32> to vector<128x128xbf16>
    %c0_15 = arith.constant 0 : index
    %c0_16 = arith.constant 0 : index
    %21 = vector.load %arg7[%c0_15, %c0_16] : memref<128x256xbf16, #tpu.memory_space<vmem>>, vector<128x256xbf16>
    %cst_17 = arith.constant dense<0.000000e+00> : vector<128x256xf32>
    %22 = tpu.matmul %20, %21, %cst_17 {dimension_numbers = #tpu.dot_dimension_numbers<[1], [0], [0], [1], [0, 0, 1, 1], [], []>} : vector<128x128xbf16>, vector<128x256xbf16>, vector<128x256xf32> -> vector<128x256xf32>
    %c0_18 = arith.constant 0 : index
    %c0_19 = arith.constant 0 : index
    %23 = vector.load %arg8[%c0_18, %c0_19] : memref<1x256xf32, #tpu.memory_space<vmem>>, vector<1x256xf32>
    %24 = vector.broadcast %23 : vector<1x256xf32> to vector<128x256xf32>
    %25 = arith.addf %22, %24 : vector<128x256xf32>
    %cst_20 = arith.constant 0.000000e+00 : f32
    %26 = vector.broadcast %cst_20 : f32 to vector<128x256xf32>
    %27 = arith.maximumf %25, %26 : vector<128x256xf32>
    %28 = arith.truncf %27 : vector<128x256xf32> to vector<128x256xbf16>
    %c0_21 = arith.constant 0 : index
    %c0_22 = arith.constant 0 : index
    %29 = vector.load %arg9[%c0_21, %c0_22] : memref<256x128xbf16, #tpu.memory_space<vmem>>, vector<256x128xbf16>
    %cst_23 = arith.constant dense<0.000000e+00> : vector<128x128xf32>
    %30 = tpu.matmul %28, %29, %cst_23 {dimension_numbers = #tpu.dot_dimension_numbers<[1], [0], [0], [1], [0, 0, 1, 1], [], []>} : vector<128x256xbf16>, vector<256x128xbf16>, vector<128x128xf32> -> vector<128x128xf32>
    %c0_24 = arith.constant 0 : index
    %c0_25 = arith.constant 0 : index
    %31 = vector.load %arg10[%c0_24, %c0_25] : memref<1x128xf32, #tpu.memory_space<vmem>>, vector<1x128xf32>
    %32 = vector.broadcast %31 : vector<1x128xf32> to vector<128x128xf32>
    %33 = arith.addf %30, %32 : vector<128x128xf32>
    %34 = arith.negf %33 : vector<128x128xf32>
    %35 = math.exp %34 : vector<128x128xf32>
    %cst_26 = arith.constant 1.000000e+00 : f32
    %36 = vector.broadcast %cst_26 : f32 to vector<128x128xf32>
    %37 = arith.addf %36, %35 : vector<128x128xf32>
    %38 = arith.divf %36, %37 : vector<128x128xf32>
    %c0_27 = arith.constant 0 : index
    %c0_28 = arith.constant 0 : index
    %39 = vector.load %arg11[%c0_27, %c0_28] : memref<128x128xf32, #tpu.memory_space<vmem>>, vector<128x128xf32>
    tpu.vector_store %arg11[%c0_27, %c0_28], %38 {strides = array<i32>} : memref<128x128xf32, #tpu.memory_space<vmem>>, vector<128x128xf32>,
    return
  }
  func.func @transform_0(%arg0: i32) -> (i32, i32) {
    %c0_i32 = arith.constant 0 : i32
    %c0_i32_0 = arith.constant 0 : i32
    return %arg0, %c0_i32 : i32, i32
  }
  func.func @transform_1(%arg0: i32) -> (i32, i32) {
    %c0_i32 = arith.constant 0 : i32
    %c0_i32_0 = arith.constant 0 : i32
    return %arg0, %c0_i32 : i32, i32
  }
  func.func @transform_2(%arg0: i32) -> (i32, i32) {
    %c0_i32 = arith.constant 0 : i32
    %c0_i32_0 = arith.constant 0 : i32
    %c0_i32_1 = arith.constant 0 : i32
    return %c0_i32, %c0_i32_0 : i32, i32
  }
  func.func @transform_3(%arg0: i32) -> (i32, i32) {
    %c0_i32 = arith.constant 0 : i32
    %c0_i32_0 = arith.constant 0 : i32
    %c0_i32_1 = arith.constant 0 : i32
    return %c0_i32, %c0_i32_0 : i32, i32
  }
  func.func @transform_4(%arg0: i32) -> (i32, i32) {
    %c0_i32 = arith.constant 0 : i32
    %c0_i32_0 = arith.constant 0 : i32
    %c0_i32_1 = arith.constant 0 : i32
    return %c0_i32, %c0_i32_0 : i32, i32
  }
  func.func @transform_5(%arg0: i32) -> (i32, i32) {
    %c0_i32 = arith.constant 0 : i32
    %c0_i32_0 = arith.constant 0 : i32
    %c0_i32_1 = arith.constant 0 : i32
    return %c0_i32, %c0_i32_0 : i32, i32
  }
  func.func @transform_6(%arg0: i32) -> (i32, i32) {
    %c0_i32 = arith.constant 0 : i32
    %c0_i32_0 = arith.constant 0 : i32
    %c0_i32_1 = arith.constant 0 : i32
    return %c0_i32, %c0_i32_0 : i32, i32
  }
  func.func @transform_7(%arg0: i32) -> (i32, i32) {
    %c0_i32 = arith.constant 0 : i32
    %c0_i32_0 = arith.constant 0 : i32
    %c0_i32_1 = arith.constant 0 : i32
    return %c0_i32, %c0_i32_0 : i32, i32
  }
  func.func @transform_8(%arg0: i32) -> (i32, i32) {
    %c0_i32 = arith.constant 0 : i32
    %c0_i32_0 = arith.constant 0 : i32
    %c0_i32_1 = arith.constant 0 : i32
    return %c0_i32, %c0_i32_0 : i32, i32
  }
  func.func @transform_9(%arg0: i32) -> (i32, i32) {
    %c0_i32 = arith.constant 0 : i32
    %c0_i32_0 = arith.constant 0 : i32
    %c0_i32_1 = arith.constant 0 : i32
    return %c0_i32, %c0_i32_0 : i32, i32
  }
  func.func @transform_10(%arg0: i32) -> (i32, i32) {
    %c0_i32 = arith.constant 0 : i32
    %c0_i32_0 = arith.constant 0 : i32
    return %arg0, %c0_i32 : i32, i32
  }
  func.func @transform_11(%arg0: i32) -> (i32, i32) {
    %c0_i32 = arith.constant 0 : i32
    %c0_i32_0 = arith.constant 0 : i32
    return %arg0, %c0_i32 : i32, i32
  }
}

</mosaic_0001>

<bundles_post_ra>
// kernel: vae_forward.1
= control target key start
LH: loop header
LB: loop body
LE: loop exit
PB: predicated region body
PF: predicated region fallthrough
CT: control target
= control target key end

     0   :  { %s2348_s17 = smov 0   ;;  %s2904_s0 = inlined_call_operand.vmem [shape: bf16[256,128], index: 0, kind: input, shape index: {}]   ;;  %s2905_s1 = inlined_call_operand.vmem [shape: f32[256,128], index: 1, kind: input, shape index: {}]   ;;  %s2906_s2 = inlined_call_operand.vmem [shape: bf16[128,256], index: 2, kind: input, shape index: {}]   ;;  %s2907_s3 = inlined_call_operand.vmem [shape: f32[1,256], index: 3, kind: input, shape index: {}]   ;;  %s2908_s4 = inlined_call_operand.vmem [shape: bf16[256,256], index: 4, kind: input, shape index: {}]   ;;  %s2909_s5 = inlined_call_operand.vmem [shape: f32[1,256], index: 5, kind: input, shape index: {}]   ;;  %s2910_s6 = inlined_call_operand.vmem [shape: bf16[128,256], index: 6, kind: input, shape index: {}]   ;;  %s2911_s7 = inlined_call_operand.vmem [shape: f32[1,256], index: 7, kind: input, shape index: {}]   ;;  %s2912_s8 = inlined_call_operand.vmem [shape: bf16[256,128], index: 8, kind: input, shape index: {}]   ;;  %s2913_s9 = inlined_call_operand.vmem [shape: f32[1,128], index: 9, kind: input, shape index: {}]   ;;  %s2914_s10 = inlined_call_operand.vmem [shape: f32[256,128], index: 10, kind: output, shape index: {0}]   ;;  %s2915_s11 = inlined_call_operand.vmem [shape: f32[256,256], index: 11, kind: output, shape index: {1}]  }
   0x1 LB: > { %s1884_s18 = sadd.s32 4294967295, %s2285_s17   ;;  %p1888_p0 = scmp.ge.s32.totalorder %s2285_s17, 1  ;;  %s2285_s17 = sphi %s2348_s17, %s22_s17  }
   0x2   : > { %p352_p1 = scmp.lt.s32.totalorder %s2285_s17, 3 }
   0x4   : > { %p353_p2 = pnand %p1888_p0, %p352_p1 }
   0x5   : > { %v2095_v0 = vld [vmem:[%s2906_s2 + $0x4] ss:$8 sps:$4 sm:$0xff] (!%p353_p2)   ;;  %s1889_s21 = sshll.u32 (!%p353_p2), %s1884_s18, 4  ;;  %v2097_v1 = vld [vmem:[%s2906_s2] ss:$8 sps:$4 sm:$0xff] (!%p353_p2)   ;;  %v2287_v2 = vmov (!%p353_p2), 0  }
   0x6   : > { %356 = sbr.rel (%p353_p2) target bundleno = 1007 (0x3ef), region = 60  ;;  %633 = vmatprep.mubr.bf16.mxu0 (!%p353_p2), %v2287_v2  ;;  %p404_p3 = scmp.lt.s32.totalorder (!%p353_p2), %s1889_s21, 31  ;;  %601 = vmatprep.subr.bf16.mxu0 (!%p353_p2), %v2095_v0  ;;  %v2098_v3 = vld [vmem:[%s2906_s2 + $0x14] ss:$8 sps:$4 sm:$0xff] (!%p353_p2)   ;;  %v2100_v4 = vld [vmem:[%s2906_s2 + $0x10] ss:$8 sps:$4 sm:$0xff] (!%p353_p2)  }
   0x7   : > { %602 = vmatpush1.bf16.msra.mxu0 (!%p353_p2), %v2097_v1  ;;  %v2101_v5 = vld [vmem:[%s2906_s2 + $0x24] ss:$8 sps:$4 sm:$0xff] (!%p353_p2)   ;;  %v2103_v6 = vld [vmem:[%s2906_s2 + $0x20] ss:$8 sps:$4 sm:$0xff] (!%p353_p2)   ;;  %v2104_v7 = vld [vmem:[%s2906_s2 + $0x34] ss:$8 sps:$4 sm:$0xff] (!%p353_p2)  }
   0x8   : > { %603 = vmatprep.subr.bf16.mxu0 (!%p353_p2), %v2098_v3  ;;  %v2106_v8 = vld [vmem:[%s2906_s2 + $0x30] ss:$8 sps:$4 sm:$0xff] (!%p353_p2)   ;;  %v2107_v9 = vld [vmem:[%s2906_s2 + $0x44] ss:$8 sps:$4 sm:$0xff] (!%p353_p2)   ;;  %v2109_v10 = vld [vmem:[%s2906_s2 + $0x40] ss:$8 sps:$4 sm:$0xff] (!%p353_p2)  }
   0x9   : > { %v2110_v11 = vld [vmem:[%s2906_s2 + $0x54] ss:$8 sps:$4 sm:$0xff] (!%p353_p2)   ;;  %v2112_v12 = vld [vmem:[%s2906_s2 + $0x50] ss:$8 sps:$4 sm:$0xff] (!%p353_p2)   ;;  %v2113_v13 = vld [vmem:[%s2906_s2 + $0x64] ss:$8 sps:$4 sm:$0xff] (!%p353_p2)  }
   0xa   : > { %v2127_v14 = vld [vmem:[%s2908_s4 + $0x4] ss:$8 sps:$4 sm:$0xff] (!%p353_p2)   ;;  %v2129_v15 = vld [vmem:[%s2908_s4] ss:$8 sps:$4 sm:$0xff] (!%p353_p2)   ;;  %v2130_v16 = vld [vmem:[%s2908_s4 + $0x14] ss:$8 sps:$4 sm:$0xff] (!%p353_p2)  }
   0xb   : > { %604 = vmatpush1.bf16.msra.mxu0 (!%p353_p2), %v2100_v4  ;;  %966 = vmatprep.subr.bf16.mxu1 (!%p353_p2), %v2127_v14  ;;  %v2132_v17 = vld [vmem:[%s2908_s4 + $0x10] ss:$8 sps:$4 sm:$0xff] (!%p353_p2)   ;;  %v2115_v18 = vld [vmem:[%s2906_s2 + $0x60] ss:$8 sps:$4 sm:$0xff] (!%p353_p2)   ;;  %v2133_v19 = vld [vmem:[%s2908_s4 + $0x24] ss:$8 sps:$4 sm:$0xff] (!%p353_p2)  }
   0xc   : > { %605 = vmatprep.subr.bf16.mxu0 (!%p353_p2), %v2101_v5  ;;  %967 = vmatpush1.bf16.msra.mxu1 (!%p353_p2), %v2129_v15  ;;  %v2116_v20 = vld [vmem:[%s2906_s2 + $0x74] ss:$8 sps:$4 sm:$0xff] (!%p353_p2)   ;;  %v2135_v21 = vld [vmem:[%s2908_s4 + $0x20] ss:$8 sps:$4 sm:$0xff] (!%p353_p2)   ;;  %v2118_v22 = vld [vmem:[%s2906_s2 + $0x70] ss:$8 sps:$4 sm:$0xff] (!%p353_p2)  }
   0xd   : > { %s2917_s21 = smov (!%p404_p3, %s1889_s21), 31  ;;  %968 = vmatprep.subr.bf16.mxu1 %v2130_v16  ;;  %v2136_v23 = vld [vmem:[%s2908_s4 + $0x34] ss:$8 sps:$4 sm:$0xff]   ;;  %v2138_v25 = vld [vmem:[%s2908_s4 + $0x30] ss:$8 sps:$4 sm:$0xff]  }
   0xe   : > { %s1890_s30 = sshll.u32 %s2917_s21, 2  ;;  %v2139_v26 = vld [vmem:[%s2908_s4 + $0x44] ss:$8 sps:$4 sm:$0xff]   ;;  %v2141_v27 = vld [vmem:[%s2908_s4 + $0x40] ss:$8 sps:$4 sm:$0xff]   ;;  %s1892_s29 = sshll.u32 %s2917_s21, 3 }
   0xf   : > { %s2384_s19 = scalar_lea.vmem %s2904_s0, %s1890_s30  ;;  %606 = vmatpush1.bf16.msra.mxu0 %v2103_v6  ;;  %v2142_v28 = vld [vmem:[%s2908_s4 + $0x54] ss:$8 sps:$4 sm:$0xff]   ;;  %v2144_v30 = vld [vmem:[%s2908_s4 + $0x50] ss:$8 sps:$4 sm:$0xff]   ;;  %v2145_v31 = vld [vmem:[%s2908_s4 + $0x64] ss:$8 sps:$4 sm:$0xff]   ;;  %s2694_s14 = scalar_lea.vmem %s2905_s1, %s1892_s29 }
  0x10   : > { %607 = vmatprep.subr.bf16.mxu0 %v2104_v7  ;;  %969 = vmatpush1.bf16.msra.mxu1 %v2132_v17  ;;  %v2119_v24 = vld [vmem:[%s2384_s19] sm:$0xff]   ;;  %v2120_v29 = vld [vmem:[%s2384_s19 + $0x8] sm:$0xff]   ;;  %v2148_v33 = vld [vmem:[%s2908_s4 + $0x74] ss:$8 sps:$4 sm:$0xff]   ;;  %s2005_s30 = sshll.u32 %s2917_s21, 4  ;;  %s2874_s18 = scalar_lea.vmem %s2914_s10, %s1892_s29 }
  0x11   : > { %970 = vmatprep.subr.bf16.mxu1 %v2133_v19  ;;  %v2147_v32 = vld [vmem:[%s2908_s4 + $0x60] ss:$8 sps:$4 sm:$0xff]   ;;  %v2121_v34 = vld [vmem:[%s2384_s19 + $0x10] sm:$0xff]   ;;  %v2151_v36 = vld [vmem:[%s2908_s4 + $0x84] ss:$8 sps:$4 sm:$0xff]  }
  0x12   : > { %v2150_v35 = vld [vmem:[%s2908_s4 + $0x70] ss:$8 sps:$4 sm:$0xff]   ;;  %v2153_v37 = vld [vmem:[%s2908_s4 + $0x80] ss:$8 sps:$4 sm:$0xff]   ;;  %v2154_v38 = vld [vmem:[%s2908_s4 + $0x94] ss:$8 sps:$4 sm:$0xff]  }
  0x13   : > { %608 = vmatpush1.bf16.msra.mxu0 %v2106_v8  ;;  %v2122_v39 = vld [vmem:[%s2384_s19 + $0x18] sm:$0xff]   ;;  %v2157_v41 = vld [vmem:[%s2908_s4 + $0xa4] ss:$8 sps:$4 sm:$0xff]   ;;  %v2159_v42 = vld [vmem:[%s2908_s4 + $0xa0] ss:$8 sps:$4 sm:$0xff]   ;;  %v463_v8 = vlaneseq }
  0x14   : > { %609 = vmatprep.subr.bf16.mxu0 %v2107_v9  ;;  %971 = vmatpush1.bf16.msra.mxu1 %v2135_v21  ;;  %v2156_v40 = vld [vmem:[%s2908_s4 + $0x90] ss:$8 sps:$4 sm:$0xff]   ;;  %v2160_v43 = vld [vmem:[%s2908_s4 + $0xb4] ss:$8 sps:$4 sm:$0xff]   ;;  %v2123_v44 = vld [vmem:[%s2384_s19 + $0x20] sm:$0xff]  }
  0x15   : > { %972 = vmatprep.subr.bf16.mxu1 %v2136_v23  ;;  %v2162_v45 = vld [vmem:[%s2908_s4 + $0xb0] ss:$8 sps:$4 sm:$0xff]   ;;  %v2163_v46 = vld [vmem:[%s2908_s4 + $0xc4] ss:$8 sps:$4 sm:$0xff]   ;;  %v2165_v47 = vld [vmem:[%s2908_s4 + $0xc0] ss:$8 sps:$4 sm:$0xff]  }
  0x16   : > { %v2166_v48 = vld [vmem:[%s2908_s4 + $0xd4] ss:$8 sps:$4 sm:$0xff]   ;;  %v2124_v49 = vld [vmem:[%s2384_s19 + $0x28] sm:$0xff]   ;;  %v2168_v52 = vld [vmem:[%s2908_s4 + $0xd0] ss:$8 sps:$4 sm:$0xff]   ;;  %v464_v9 = vshrl.u32 %v463_v8, 7 }
  0x17   : > { %610 = vmatpush1.bf16.msra.mxu0 %v2109_v10  ;;  %v2125_v50 = vld [vmem:[%s2384_s19 + $0x30] sm:$0xff]   ;;  %v2126_v51 = vld [vmem:[%s2384_s19 + $0x38] sm:$0xff]   ;;  %v2169_v53 = vld [vmem:[%s2908_s4 + $0xe4] ss:$8 sps:$4 sm:$0xff]   ;;  %s2702_s19 = scalar_lea.vmem %s2915_s11, %s2005_s30 }
  0x18   : > { %611 = vmatprep.subr.bf16.mxu0 %v2110_v11  ;;  %973 = vmatpush1.bf16.msra.mxu1 %v2138_v25  ;;  %v2171_v54 = vld [vmem:[%s2908_s4 + $0xe0] ss:$8 sps:$4 sm:$0xff]   ;;  %v2172_v55 = vld [vmem:[%s2908_s4 + $0xf4] ss:$8 sps:$4 sm:$0xff]   ;;  %v2174_v56 = vld [vmem:[%s2908_s4 + $0xf0] ss:$8 sps:$4 sm:$0xff]  }
  0x19   : > { %974 = vmatprep.subr.bf16.mxu1 %v2139_v26  ;;  %v2175_v57 = vld [vmem:[%s2910_s6] ss:$8 sps:$4 sm:$0xff]   ;;  %v2177_v58 = vld [vmem:[%s2910_s6 + $0x4] ss:$8 sps:$4 sm:$0xff]   ;;  %v2180_v59 = vld [vmem:[%s2910_s6 + $0x14] ss:$8 sps:$4 sm:$0xff]  }
  0x1a   : > { %v2178_v60 = vld [vmem:[%s2910_s6 + $0x10] ss:$8 sps:$4 sm:$0xff]   ;;  %v2183_v61 = vld [vmem:[%s2910_s6 + $0x24] ss:$8 sps:$4 sm:$0xff]   ;;  %v2181_v62 = vld [vmem:[%s2910_s6 + $0x20] ss:$8 sps:$4 sm:$0xff]  }
  0x1b   : > { %612 = vmatpush1.bf16.msra.mxu0 %v2112_v12  ;;  %v2186_v63 = vld [vmem:[%s2910_s6 + $0x34] ss:$8 sps:$4 sm:$0xff]   ;;  %v2184_v0 = vld [vmem:[%s2910_s6 + $0x30] ss:$8 sps:$4 sm:$0xff]   ;;  %v2189_v1 = vld [vmem:[%s2910_s6 + $0x44] ss:$8 sps:$4 sm:$0xff]  }
  0x1c   : > { %613 = vmatprep.subr.bf16.mxu0 %v2113_v13  ;;  %975 = vmatpush1.bf16.msra.mxu1 %v2141_v27  ;;  %v2187_v3 = vld [vmem:[%s2910_s6 + $0x40] ss:$8 sps:$4 sm:$0xff]   ;;  %v2192_v4 = vld [vmem:[%s2910_s6 + $0x54] ss:$8 sps:$4 sm:$0xff]   ;;  %v2190_v5 = vld [vmem:[%s2910_s6 + $0x50] ss:$8 sps:$4 sm:$0xff]  }
  0x1d   : > { %976 = vmatprep.subr.bf16.mxu1 %v2142_v28  ;;  %v2195_v6 = vld [vmem:[%s2910_s6 + $0x64] ss:$8 sps:$4 sm:$0xff]   ;;  %v2193_v7 = vld [vmem:[%s2910_s6 + $0x60] ss:$8 sps:$4 sm:$0xff]   ;;  %v2567_v10 = vsub.s32 0, %v464_v9  ;;  %v2572_v12 = vsub.s32 1, %v464_v9 }
  0x1e   : > { %v461_v11 = vld [vmem:[%s2907_s3] sm:$0x3] }
  0x1f   : > { %614 = vmatpush1.bf16.msra.mxu0 %v2115_v18  ;;  %v2575_v13 = vrot.slane %v461_v11, %v2567_v10  ;;  %v2578_v14 = vrot.slane %v461_v11, %v2572_v12 }
  0x20   : > { %615 = vmatprep.subr.bf16.mxu0 %v2116_v20  ;;  %977 = vmatpush1.bf16.msra.mxu1 %v2144_v30 }
  0x21   : > { %978 = vmatprep.subr.bf16.mxu1 %v2145_v31 }
  0x23   : > { %616 = vmatpush1.bf16.msra.mxu0 %v2118_v22 }
  0x24   : > { %979 = vmatpush1.bf16.msra.mxu1 %v2147_v32  ;;  %1275 = vmatprep.subr.bf16.mxu0 %v2177_v58 }
  0x25   : > { %980 = vmatprep.subr.bf16.mxu1 %v2148_v33 }
  0x26   : > { %634 = vmatmul.mubr.bf16.vlgmr.msra.gmra.mrb[0].mxu0 %v2119_v24 }
  0x27   : > { %643 = vmatprep.mubr.bf16.mxu0 %v2287_v2  ;;  %1276 = vmatpush1.bf16.msra.mxu0 %v2175_v57 }
  0x28   : > { %981 = vmatpush1.bf16.msra.mxu1 %v2150_v35  ;;  %1277 = vmatprep.subr.bf16.mxu0 %v2180_v59 }
  0x29   : > { %982 = vmatprep.subr.bf16.mxu1 %v2151_v36 }
  0x2b   : > { %1278 = vmatpush1.bf16.msra.mxu0 %v2178_v60 }
  0x2c   : > { %983 = vmatpush1.bf16.msra.mxu1 %v2153_v37  ;;  %1279 = vmatprep.subr.bf16.mxu0 %v2183_v61 }
  0x2d   : > { %984 = vmatprep.subr.bf16.mxu1 %v2154_v38 }
  0x2e   : > { %644 = vmatmul.mubr.bf16.gmra.mrb[4].mxu0 %v2120_v29 }
  0x2f   : > { %653 = vmatprep.mubr.bf16.mxu0 %v2287_v2  ;;  %1280 = vmatpush1.bf16.msra.mxu0 %v2181_v62 }
  0x30   : > { %985 = vmatpush1.bf16.msra.mxu1 %v2156_v40  ;;  %1281 = vmatprep.subr.bf16.mxu0 %v2186_v63 }
  0x31   : > { %986 = vmatprep.subr.bf16.mxu1 %v2157_v41 }
  0x33   : > { %1282 = vmatpush1.bf16.msra.mxu0 %v2184_v0 }
  0x34   : > { %987 = vmatpush1.bf16.msra.mxu1 %v2159_v42  ;;  %1283 = vmatprep.subr.bf16.mxu0 %v2189_v1 }
  0x35   : > { %988 = vmatprep.subr.bf16.mxu1 %v2160_v43 }
  0x36   : > { %654 = vmatmul.mubr.bf16.gmra.mrb[8].mxu0 %v2121_v34 }
  0x37   : > { %663 = vmatprep.mubr.bf16.mxu0 %v2287_v2  ;;  %1284 = vmatpush1.bf16.msra.mxu0 %v2187_v3 }
  0x38   : > { %989 = vmatpush1.bf16.msra.mxu1 %v2162_v45  ;;  %1285 = vmatprep.subr.bf16.mxu0 %v2192_v4 }
  0x39   : > { %990 = vmatprep.subr.bf16.mxu1 %v2163_v46 }
  0x3b   : > { %1286 = vmatpush1.bf16.msra.mxu0 %v2190_v5 }
  0x3c   : > { %991 = vmatpush1.bf16.msra.mxu1 %v2165_v47  ;;  %1287 = vmatprep.subr.bf16.mxu0 %v2195_v6 }
  0x3d   : > { %992 = vmatprep.subr.bf16.mxu1 %v2166_v48 }
  0x3e   : > { %664 = vmatmul.mubr.bf16.gmra.mrb[12].mxu0 %v2122_v39 }
  0x3f   : > { %673 = vmatprep.mubr.bf16.mxu0 %v2287_v2  ;;  %1288 = vmatpush1.bf16.msra.mxu0 %v2193_v7 }
  0x40   : > { %993 = vmatpush1.bf16.msra.mxu1 %v2168_v52 }
  0x41   : > { %994 = vmatprep.subr.bf16.mxu1 %v2169_v53 }
  0x44   : > { %995 = vmatpush1.bf16.msra.mxu1 %v2171_v54 }
  0x45   : > { %996 = vmatprep.subr.bf16.mxu1 %v2172_v55 }
  0x46   : > { %674 = vmatmul.mubr.bf16.gmra.mrb[16].mxu0 %v2123_v44 }
  0x47   : > { %683 = vmatprep.mubr.bf16.mxu0 %v2287_v2 }
  0x48   : > { %997 = vmatpush1.bf16.msra.mxu1 %v2174_v56 }
  0x4e   : > { %684 = vmatmul.mubr.bf16.gmra.mrb[20].mxu0 %v2124_v49 }
  0x4f   : > { %693 = vmatprep.mubr.bf16.mxu0 %v2287_v2 }
  0x56   : > { %694 = vmatmul.mubr.bf16.gmra.mrb[24].mxu0 %v2125_v50 }
  0x57   : > { %703 = vmatprep.mubr.bf16.mxu0 %v2287_v2 }
  0x5e   : > { %704 = vmatmul.mubr.bf16.gmra.mrb[28].mxu0 %v2126_v51 }
  0x5f   : > { %1307 = vmatprep.mubr.bf16.mxu0 %v2287_v2 }
  0xf9   : > { %v635_v15 = vpop.f32.mrb[0].mxu0 }
  0xfa   : > { %v636_v16 = vadd.f32 %v635_v15, %v2575_v13  ;;  %v637_v17 = vpop.f32.mrb[1].mxu0 }
  0xfb   : > { %v638_v18 = vadd.f32 %v637_v17, %v2578_v14  ;;  %v639_v19 = vpop.f32.mrb[2].mxu0 }
  0xfc   : > { %v640_v20 = vadd.f32 %v639_v19, %v2575_v13  ;;  %v641_v21 = vpop.f32.mrb[3].mxu0  ;;  %v714_v23 = vmax.f32 %v636_v16, 0.0 }
  0xfd   : > { %v642_v22 = vadd.f32 %v641_v21, %v2578_v14  ;;  %v715_v25 = vmax.f32 %v638_v18, 0.0 }
  0xfe   : > { %v716_v24 = vmax.f32 %v640_v20, 0.0 }
  0xff   : > { %v717_v26 = vmax.f32 %v642_v22, 0.0 }
 0x100   : > { %v746_v27 = vpack.c.bf16 %v716_v24, %v714_v23 }
 0x101   : > { %v645_v28 = vpop.f32.mrb[4].mxu0  ;;  %v747_v29 = vpack.c.bf16 %v717_v26, %v715_v25 }
 0x102   : > { %v646_v30 = vadd.f32 %v645_v28, %v2575_v13  ;;  %v647_v31 = vpop.f32.mrb[5].mxu0 }
 0x103   : > { %v648_v32 = vadd.f32 %v647_v31, %v2578_v14  ;;  %v649_v33 = vpop.f32.mrb[6].mxu0  ;;  %998 = vmatprep.mubr.bf16.mxu1 %v747_v29 }
 0x104   : > { %v650_v34 = vadd.f32 %v649_v33, %v2575_v13  ;;  %v651_v35 = vpop.f32.mrb[7].mxu0  ;;  %999 = vmatmul.mubr.bf16.vlgmr.msra.gmra.mrb[0].mxu1 %v746_v27  ;;  %v718_v37 = vmax.f32 %v646_v30, 0.0 }
 0x105   : > { %v652_v36 = vadd.f32 %v651_v35, %v2578_v14  ;;  %v719_v39 = vmax.f32 %v648_v32, 0.0 }
 0x106   : > { %v720_v38 = vmax.f32 %v650_v34, 0.0 }
 0x107   : > { %v721_v40 = vmax.f32 %v652_v36, 0.0 }
 0x108   : > { %v748_v41 = vpack.c.bf16 %v720_v38, %v718_v37 }
 0x109   : > { %v749_v42 = vpack.c.bf16 %v721_v40, %v719_v39  ;;  %v655_v43 = vpop.f32.mrb[8].mxu0 }
 0x10a   : > { %v656_v44 = vadd.f32 %v655_v43, %v2575_v13  ;;  %v657_v45 = vpop.f32.mrb[9].mxu0 }
 0x10b   : > { %v658_v46 = vadd.f32 %v657_v45, %v2578_v14  ;;  %v659_v47 = vpop.f32.mrb[10].mxu0  ;;  %1008 = vmatprep.mubr.bf16.mxu1 %v749_v42 }
 0x10c   : > { %v660_v48 = vadd.f32 %v659_v47, %v2575_v13  ;;  %v661_v49 = vpop.f32.mrb[11].mxu0  ;;  %1009 = vmatmul.mubr.bf16.gmra.mrb[4].mxu1 %v748_v41  ;;  %v722_v51 = vmax.f32 %v656_v44, 0.0 }
 0x10d   : > { %v662_v50 = vadd.f32 %v661_v49, %v2578_v14  ;;  %v723_v53 = vmax.f32 %v658_v46, 0.0 }
 0x10e   : > { %v724_v52 = vmax.f32 %v660_v48, 0.0 }
 0x10f   : > { %v725_v54 = vmax.f32 %v662_v50, 0.0 }
 0x110   : > { %v750_v55 = vpack.c.bf16 %v724_v52, %v722_v51 }
 0x111   : > { %v751_v56 = vpack.c.bf16 %v725_v54, %v723_v53  ;;  %v665_v57 = vpop.f32.mrb[12].mxu0 }
 0x112   : > { %v666_v58 = vadd.f32 %v665_v57, %v2575_v13  ;;  %v667_v59 = vpop.f32.mrb[13].mxu0 }
 0x113   : > { %v668_v60 = vadd.f32 %v667_v59, %v2578_v14  ;;  %v669_v61 = vpop.f32.mrb[14].mxu0  ;;  %1018 = vmatprep.mubr.bf16.mxu1 %v751_v56 }
 0x114   : > { %v670_v62 = vadd.f32 %v669_v61, %v2575_v13  ;;  %v671_v63 = vpop.f32.mrb[15].mxu0  ;;  %1019 = vmatmul.mubr.bf16.gmra.mrb[8].mxu1 %v750_v55  ;;  %v726_v1 = vmax.f32 %v666_v58, 0.0 }
 0x115   : > { %v672_v0 = vadd.f32 %v671_v63, %v2578_v14  ;;  %v727_v4 = vmax.f32 %v668_v60, 0.0 }
 0x116   : > { %v728_v3 = vmax.f32 %v670_v62, 0.0 }
 0x117   : > { %v729_v5 = vmax.f32 %v672_v0, 0.0 }
 0x118   : > { %v752_v6 = vpack.c.bf16 %v728_v3, %v726_v1 }
 0x119   : > { %v753_v7 = vpack.c.bf16 %v729_v5, %v727_v4  ;;  %v675_v8 = vpop.f32.mrb[16].mxu0  ;;  %v2198_v5 = vld [vmem:[%s2910_s6 + $0x74] ss:$8 sps:$4 sm:$0xff]  }
 0x11a   : > { %v676_v9 = vadd.f32 %v675_v8, %v2575_v13  ;;  %v677_v11 = vpop.f32.mrb[17].mxu0  ;;  %1289 = vmatprep.subr.bf16.mxu0 %v2198_v5  ;;  %v2636_v8 = vld [vmem:[%s2912_s8 + $0x8] sm:$0xff]  }
 0x11b   : > { %v678_v15 = vadd.f32 %v677_v11, %v2578_v14  ;;  %v679_v16 = vpop.f32.mrb[18].mxu0  ;;  %1028 = vmatprep.mubr.bf16.mxu1 %v753_v7  ;;  %v2629_v7 = vld [vmem:[%s2912_s8 + $0x48] sm:$0xff]   ;;  %v2648_v11 = vld [vmem:[%s2912_s8 + $0x10] sm:$0xff]  }
 0x11c   : > { %v680_v17 = vadd.f32 %v679_v16, %v2575_v13  ;;  %v681_v18 = vpop.f32.mrb[19].mxu0  ;;  %1029 = vmatmul.mubr.bf16.gmra.mrb[12].mxu1 %v752_v6  ;;  %v730_v20 = vmax.f32 %v676_v9, 0.0  ;;  %v2624_v6 = vld [vmem:[%s2912_s8] sm:$0xff]   ;;  %v2641_v9 = vld [vmem:[%s2912_s8 + $0x50] sm:$0xff]   ;;  %v2660_v16 = vld [vmem:[%s2912_s8 + $0x18] sm:$0xff]  }
 0x11d   : > { %v682_v19 = vadd.f32 %v681_v18, %v2578_v14  ;;  %v731_v22 = vmax.f32 %v678_v15, 0.0  ;;  %v2653_v15 = vld [vmem:[%s2912_s8 + $0x58] sm:$0xff]   ;;  %v2672_v18 = vld [vmem:[%s2912_s8 + $0x20] sm:$0xff]  }
 0x11e   : > { %v732_v21 = vmax.f32 %v680_v17, 0.0  ;;  %v2665_v17 = vld [vmem:[%s2912_s8 + $0x60] sm:$0xff]  }
 0x11f   : > { %v733_v23 = vmax.f32 %v682_v19, 0.0  ;;  %v2677_v19 = vld [vmem:[%s2912_s8 + $0x68] sm:$0xff]  }
 0x120   : > { %v754_v24 = vpack.c.bf16 %v732_v21, %v730_v20  ;;  %v794_v20 = vld [vmem:[%s2909_s5] sm:$0x3] }
 0x121   : > { %v755_v25 = vpack.c.bf16 %v733_v23, %v731_v22  ;;  %v685_v26 = vpop.f32.mrb[20].mxu0  ;;  %v2687_v21 = vrot.slane %v794_v20, %v2567_v10  ;;  %v2697_v22 = vrot.slane %v794_v20, %v2572_v12 }
 0x122   : > { %v686_v27 = vadd.f32 %v685_v26, %v2575_v13  ;;  %v687_v28 = vpop.f32.mrb[21].mxu0  ;;  %v1111_v26 = vld [vmem:[%s2694_s14] sm:$0xff] }
 0x123   : > { %v688_v29 = vadd.f32 %v687_v28, %v2578_v14  ;;  %v689_v30 = vpop.f32.mrb[22].mxu0  ;;  %1038 = vmatprep.mubr.bf16.mxu1 %v755_v25 }
 0x124   : > { %v690_v31 = vadd.f32 %v689_v30, %v2575_v13  ;;  %v691_v32 = vpop.f32.mrb[23].mxu0  ;;  %1039 = vmatmul.mubr.bf16.gmra.mrb[16].mxu1 %v754_v24  ;;  %v734_v34 = vmax.f32 %v686_v27, 0.0 }
 0x125   : > { %v692_v33 = vadd.f32 %v691_v32, %v2578_v14  ;;  %v735_v36 = vmax.f32 %v688_v29, 0.0 }
 0x126   : > { %v736_v35 = vmax.f32 %v690_v31, 0.0  ;;  %v1112_v31 = vld [vmem:[%s2694_s14 + $0x8] sm:$0xff] }
 0x127   : > { %v737_v37 = vmax.f32 %v692_v33, 0.0 }
 0x128   : > { %v756_v38 = vpack.c.bf16 %v736_v35, %v734_v34 }
 0x129   : > { %v757_v39 = vpack.c.bf16 %v737_v37, %v735_v36  ;;  %v695_v40 = vpop.f32.mrb[24].mxu0 }
 0x12a   : > { %v696_v41 = vadd.f32 %v695_v40, %v2575_v13  ;;  %v697_v42 = vpop.f32.mrb[25].mxu0  ;;  %v1113_v40 = vld [vmem:[%s2694_s14 + $0x10] sm:$0xff] }
 0x12b   : > { %v698_v43 = vadd.f32 %v697_v42, %v2578_v14  ;;  %v699_v44 = vpop.f32.mrb[26].mxu0  ;;  %1048 = vmatprep.mubr.bf16.mxu1 %v757_v39 }
 0x12c   : > { %v700_v45 = vadd.f32 %v699_v44, %v2575_v13  ;;  %v701_v46 = vpop.f32.mrb[27].mxu0  ;;  %1049 = vmatmul.mubr.bf16.gmra.mrb[20].mxu1 %v756_v38  ;;  %v738_v48 = vmax.f32 %v696_v41, 0.0 }
 0x12d   : > { %v702_v47 = vadd.f32 %v701_v46, %v2578_v14  ;;  %v739_v50 = vmax.f32 %v698_v43, 0.0  ;;  %v1114_v46 = vld [vmem:[%s2694_s14 + $0x18] sm:$0xff] }
 0x12e   : > { %v740_v49 = vmax.f32 %v700_v45, 0.0 }
 0x12f   : > { %v741_v51 = vmax.f32 %v702_v47, 0.0 }
 0x130   : > { %v758_v52 = vpack.c.bf16 %v740_v49, %v738_v48 }
 0x131   : > { %v759_v53 = vpack.c.bf16 %v741_v51, %v739_v50  ;;  %v705_v54 = vpop.f32.mrb[28].mxu0 }
 0x132   : > { %v706_v55 = vadd.f32 %v705_v54, %v2575_v13  ;;  %v707_v56 = vpop.f32.mrb[29].mxu0 }
 0x133   : > { %v708_v57 = vadd.f32 %v707_v56, %v2578_v14  ;;  %v709_v58 = vpop.f32.mrb[30].mxu0  ;;  %1058 = vmatprep.mubr.bf16.mxu1 %v759_v53 }
 0x134   : > { %v710_v59 = vadd.f32 %v709_v58, %v2575_v13  ;;  %v711_v60 = vpop.f32.mrb[31].mxu0  ;;  %1059 = vmatmul.mubr.bf16.gmra.mrb[24].mxu1 %v758_v52  ;;  %v742_v62 = vmax.f32 %v706_v55, 0.0  ;;  %v2196_v13 = vld [vmem:[%s2910_s6 + $0x70] ss:$8 sps:$4 sm:$0xff]   ;;  %v1115_v55 = vld [vmem:[%s2694_s14 + $0x20] sm:$0xff] }
 0x135   : > { %v712_v61 = vadd.f32 %v711_v60, %v2578_v14  ;;  %v743_v0 = vmax.f32 %v708_v57, 0.0  ;;  %1290 = vmatpush1.bf16.msra.mxu0 %v2196_v13  ;;  %v2199_v14 = vld [vmem:[%s2912_s8 + $0x40] sm:$0xff]  }
 0x136   : > { %v744_v63 = vmax.f32 %v710_v59, 0.0  ;;  %2070 = vmatprep.subr.bf16.mxu1 %v2199_v14  ;;  %2006 = vmatprep.subr.bf16.mxu0 %v2199_v14  ;;  %v1117_v14 = vld [vmem:[%s2694_s14 + $0x30] sm:$0xff] }
 0x137   : > { %v745_v1 = vmax.f32 %v712_v61, 0.0  ;;  %2078 = vmatpush3.bf16.msra.mxu1 %v2624_v6  ;;  %v1116_v61 = vld [vmem:[%s2694_s14 + $0x28] sm:$0xff] }
 0x138   : > { %v760_v3 = vpack.c.bf16 %v744_v63, %v742_v62  ;;  %2071 = vmatprep.subr.bf16.mxu1 %v2629_v7 }
 0x139   : > { %v761_v4 = vpack.c.bf16 %v745_v1, %v743_v0 }
 0x13b   : > { %1068 = vmatprep.mubr.bf16.mxu1 %v761_v4  ;;  %2079 = vmatpush3.bf16.msra.mxu1 %v2636_v8 }
 0x13c   : > { %1069 = vmatmul.mubr.bf16.gmra.mrb[28].mxu1 %v760_v3  ;;  %2072 = vmatprep.subr.bf16.mxu1 %v2641_v9 }
 0x13f   : > { %2080 = vmatpush3.bf16.msra.mxu1 %v2648_v11 }
 0x140   : > { %2073 = vmatprep.subr.bf16.mxu1 %v2653_v15 }
 0x143   : > { %2081 = vmatpush3.bf16.msra.mxu1 %v2660_v16 }
 0x144   : > { %2074 = vmatprep.subr.bf16.mxu1 %v2665_v17 }
 0x147   : > { %2082 = vmatpush3.bf16.msra.mxu1 %v2672_v18 }
 0x148   : > { %2075 = vmatprep.subr.bf16.mxu1 %v2677_v19 }
 0x1d7   : > { %v1000_v23 = vpop.f32.mrb[0].mxu1 }
 0x1d8   : > { %v1001_v24 = vadd.f32 %v1000_v23, %v2687_v21  ;;  %v1002_v25 = vpop.f32.mrb[1].mxu1 }
 0x1d9   : > { %v1003_v27 = vadd.f32 %v1002_v25, %v2697_v22  ;;  %v1004_v28 = vpop.f32.mrb[2].mxu1 }
 0x1da   : > { %1079 = vst [vmem:[%s2702_s19] sm:$0xff] %v1001_v24  ;;  %v1005_v29 = vadd.f32 %v1004_v28, %v2687_v21  ;;  %v1006_v30 = vpop.f32.mrb[3].mxu1  ;;  %v1119_v28 = vld [vmem:[%s2694_s14 + $0x40] sm:$0xff] }
 0x1db   : > { %1080 = vst [vmem:[%s2702_s19 + $0x8] sm:$0xff] %v1003_v27  ;;  %v1127_v32 = vmul.f32 %v1111_v26, %v1003_v27  ;;  %v1007_v33 = vadd.f32 %v1006_v30, %v2697_v22 }
 0x1dc   : > { %1081 = vst [vmem:[%s2702_s19 + $0x10] sm:$0xff] %v1005_v29 }
 0x1dd   : > { %v1143_v34 = vadd.f32 %v1127_v32, %v1001_v24  ;;  %1082 = vst [vmem:[%s2702_s19 + $0x18] sm:$0xff] %v1007_v33  ;;  %v1128_v35 = vmul.f32 %v1112_v31, %v1007_v33  ;;  %v1120_v33 = vld [vmem:[%s2694_s14 + $0x48] sm:$0xff] }
 0x1df   : > { %v1144_v36 = vadd.f32 %v1128_v35, %v1005_v29  ;;  %v1010_v37 = vpop.f32.mrb[4].mxu1 }
 0x1e0   : > { %v1011_v38 = vadd.f32 %v1010_v37, %v2687_v21  ;;  %v1012_v39 = vpop.f32.mrb[5].mxu1 }
 0x1e1   : > { %v1159_v41 = vpack.c.bf16 %v1144_v36, %v1143_v34  ;;  %v1013_v42 = vadd.f32 %v1012_v39, %v2697_v22  ;;  %v1014_v43 = vpop.f32.mrb[6].mxu1 }
 0x1e2   : > { %1083 = vst [vmem:[%s2702_s19 + $0x20] sm:$0xff] %v1011_v38  ;;  %v1015_v44 = vadd.f32 %v1014_v43, %v2687_v21  ;;  %v1016_v45 = vpop.f32.mrb[7].mxu1 }
 0x1e3   : > { %1084 = vst [vmem:[%s2702_s19 + $0x28] sm:$0xff] %v1013_v42  ;;  %v1129_v47 = vmul.f32 %v1113_v40, %v1013_v42  ;;  %v1017_v48 = vadd.f32 %v1016_v45, %v2697_v22  ;;  %1308 = vmatmul.mubr.bf16.vlgmr.msra.gmra.mrb[32].mxu0 %v1159_v41  ;;  %v1121_v41 = vld [vmem:[%s2694_s14 + $0x50] sm:$0xff] }
 0x1e4   : > { %1085 = vst [vmem:[%s2702_s19 + $0x30] sm:$0xff] %v1015_v44  ;;  %1317 = vmatprep.mubr.bf16.mxu0 %v2287_v2  ;;  %2007 = vmatpush3.bf16.msra.mxu0 %v2624_v6 }
 0x1e5   : > { %v1145_v49 = vadd.f32 %v1129_v47, %v1011_v38  ;;  %1086 = vst [vmem:[%s2702_s19 + $0x38] sm:$0xff] %v1017_v48  ;;  %v1130_v50 = vmul.f32 %v1114_v46, %v1017_v48  ;;  %2008 = vmatprep.subr.bf16.mxu0 %v2629_v7  ;;  %v1122_v47 = vld [vmem:[%s2694_s14 + $0x58] sm:$0xff] }
 0x1e7   : > { %v1146_v51 = vadd.f32 %v1130_v50, %v1015_v44  ;;  %v1020_v52 = vpop.f32.mrb[8].mxu1 }
 0x1e8   : > { %v1021_v53 = vadd.f32 %v1020_v52, %v2687_v21  ;;  %v1022_v54 = vpop.f32.mrb[9].mxu1  ;;  %2009 = vmatpush3.bf16.msra.mxu0 %v2636_v8 }
 0x1e9   : > { %v1023_v56 = vadd.f32 %v1022_v54, %v2697_v22  ;;  %v1024_v57 = vpop.f32.mrb[10].mxu1  ;;  %v1160_v58 = vpack.c.bf16 %v1146_v51, %v1145_v49  ;;  %2010 = vmatprep.subr.bf16.mxu0 %v2641_v9 }
 0x1ea   : > { %1087 = vst [vmem:[%s2702_s19 + $0x40] sm:$0xff] %v1021_v53  ;;  %v1025_v59 = vadd.f32 %v1024_v57, %v2687_v21  ;;  %v1026_v60 = vpop.f32.mrb[11].mxu1 }
 0x1eb   : > { %1088 = vst [vmem:[%s2702_s19 + $0x48] sm:$0xff] %v1023_v56  ;;  %v1131_v62 = vmul.f32 %v1115_v55, %v1023_v56  ;;  %v1027_v63 = vadd.f32 %v1026_v60, %v2697_v22  ;;  %1318 = vmatmul.mubr.bf16.gmra.mrb[36].mxu0 %v1160_v58  ;;  %v1123_v56 = vld [vmem:[%s2694_s14 + $0x60] sm:$0xff] }
 0x1ec   : > { %1089 = vst [vmem:[%s2702_s19 + $0x50] sm:$0xff] %v1025_v59  ;;  %1327 = vmatprep.mubr.bf16.mxu0 %v2287_v2  ;;  %2011 = vmatpush3.bf16.msra.mxu0 %v2648_v11 }
 0x1ed   : > { %v1147_v0 = vadd.f32 %v1131_v62, %v1021_v53  ;;  %1090 = vst [vmem:[%s2702_s19 + $0x58] sm:$0xff] %v1027_v63  ;;  %v1132_v1 = vmul.f32 %v1116_v61, %v1027_v63  ;;  %2012 = vmatprep.subr.bf16.mxu0 %v2653_v15  ;;  %v1118_v15 = vld [vmem:[%s2694_s14 + $0x38] sm:$0xff]  ;;  %v1124_v62 = vld [vmem:[%s2694_s14 + $0x68] sm:$0xff] }
 0x1ef   : > { %v1148_v3 = vadd.f32 %v1132_v1, %v1025_v59  ;;  %v1030_v4 = vpop.f32.mrb[12].mxu1 }
 0x1f0   : > { %v1031_v5 = vadd.f32 %v1030_v4, %v2687_v21  ;;  %v1032_v13 = vpop.f32.mrb[13].mxu1  ;;  %2013 = vmatpush3.bf16.msra.mxu0 %v2660_v16 }
 0x1f1   : > { %v1033_v6 = vadd.f32 %v1032_v13, %v2697_v22  ;;  %v1034_v7 = vpop.f32.mrb[14].mxu1  ;;  %v1161_v8 = vpack.c.bf16 %v1148_v3, %v1147_v0  ;;  %2014 = vmatprep.subr.bf16.mxu0 %v2665_v17 }
 0x1f2   : > { %1091 = vst [vmem:[%s2702_s19 + $0x60] sm:$0xff] %v1031_v5  ;;  %v1035_v9 = vadd.f32 %v1034_v7, %v2687_v21  ;;  %v1036_v11 = vpop.f32.mrb[15].mxu1 }
 0x1f3   : > { %1092 = vst [vmem:[%s2702_s19 + $0x68] sm:$0xff] %v1033_v6  ;;  %v1133_v20 = vmul.f32 %v1117_v14, %v1033_v6  ;;  %v1037_v23 = vadd.f32 %v1036_v11, %v2697_v22  ;;  %1328 = vmatmul.mubr.bf16.gmra.mrb[40].mxu0 %v1161_v8  ;;  %v1125_v6 = vld [vmem:[%s2694_s14 + $0x70] sm:$0xff] }
 0x1f4   : > { %1093 = vst [vmem:[%s2702_s19 + $0x70] sm:$0xff] %v1035_v9  ;;  %1337 = vmatprep.mubr.bf16.mxu0 %v2287_v2  ;;  %2015 = vmatpush3.bf16.msra.mxu0 %v2672_v18 }
 0x1f5   : > { %v1149_v16 = vadd.f32 %v1133_v20, %v1031_v5  ;;  %1094 = vst [vmem:[%s2702_s19 + $0x78] sm:$0xff] %v1037_v23  ;;  %v1134_v17 = vmul.f32 %v1118_v15, %v1037_v23  ;;  %2016 = vmatprep.subr.bf16.mxu0 %v2677_v19  ;;  %v1126_v20 = vld [vmem:[%s2694_s14 + $0x78] sm:$0xff] }
 0x1f7   : > { %v1150_v24 = vadd.f32 %v1134_v17, %v1035_v9  ;;  %v1040_v25 = vpop.f32.mrb[16].mxu1 }
 0x1f8   : > { %v1041_v26 = vadd.f32 %v1040_v25, %v2687_v21  ;;  %v1042_v27 = vpop.f32.mrb[17].mxu1 }
 0x1f9   : > { %v1043_v29 = vadd.f32 %v1042_v27, %v2697_v22  ;;  %v1044_v30 = vpop.f32.mrb[18].mxu1  ;;  %v1162_v31 = vpack.c.bf16 %v1150_v24, %v1149_v16  ;;  %v2213_v27 = vld [vmem:[%s2912_s8 + $0x78] sm:$0xff]  }
 0x1fa   : > { %1095 = vst [vmem:[%s2702_s19 + $0x80] sm:$0xff] %v1041_v26  ;;  %v1045_v18 = vadd.f32 %v1044_v30, %v2687_v21  ;;  %v1046_v32 = vpop.f32.mrb[19].mxu1 }
 0x1fb   : > { %1096 = vst [vmem:[%s2702_s19 + $0x88] sm:$0xff] %v1043_v29  ;;  %v1135_v19 = vmul.f32 %v1119_v28, %v1043_v29  ;;  %v1047_v34 = vadd.f32 %v1046_v32, %v2697_v22  ;;  %1338 = vmatmul.mubr.bf16.gmra.mrb[44].mxu0 %v1162_v31  ;;  %v2214_v28 = vld [vmem:[%s2912_s8 + $0x38] sm:$0xff]   ;;  %v1183_v29 = vld [vmem:[%s2911_s7] sm:$0x3] }
 0x1fc   : > { %1097 = vst [vmem:[%s2702_s19 + $0x90] sm:$0xff] %v1045_v18  ;;  %1347 = vmatprep.mubr.bf16.mxu0 %v2287_v2  ;;  %v2820_v30 = vrot.slane %v1183_v29, %v2567_v10  ;;  %v2823_v31 = vrot.slane %v1183_v29, %v2572_v12 }
 0x1fd   : > { %v1151_v35 = vadd.f32 %v1135_v19, %v1041_v26  ;;  %1098 = vst [vmem:[%s2702_s19 + $0x98] sm:$0xff] %v1047_v34  ;;  %v1136_v36 = vmul.f32 %v1120_v33, %v1047_v34 }
 0x1ff   : > { %v1152_v37 = vadd.f32 %v1136_v36, %v1045_v18  ;;  %v1050_v38 = vpop.f32.mrb[20].mxu1 }
 0x200   : > { %v1051_v39 = vadd.f32 %v1050_v38, %v2687_v21  ;;  %v1052_v40 = vpop.f32.mrb[21].mxu1 }
 0x201   : > { %v1053_v42 = vadd.f32 %v1052_v40, %v2697_v22  ;;  %v1054_v43 = vpop.f32.mrb[22].mxu1  ;;  %v1163_v44 = vpack.c.bf16 %v1152_v37, %v1151_v35 }
 0x202   : > { %1099 = vst [vmem:[%s2702_s19 + $0xa0] sm:$0xff] %v1051_v39  ;;  %v1055_v45 = vadd.f32 %v1054_v43, %v2687_v21  ;;  %v1056_v46 = vpop.f32.mrb[23].mxu1 }
 0x203   : > { %1100 = vst [vmem:[%s2702_s19 + $0xa8] sm:$0xff] %v1053_v42  ;;  %v1137_v48 = vmul.f32 %v1121_v41, %v1053_v42  ;;  %v1057_v49 = vadd.f32 %v1056_v46, %v2697_v22  ;;  %1348 = vmatmul.mubr.bf16.gmra.mrb[48].mxu0 %v1163_v44 }
 0x204   : > { %1101 = vst [vmem:[%s2702_s19 + $0xb0] sm:$0xff] %v1055_v45  ;;  %1357 = vmatprep.mubr.bf16.mxu0 %v2287_v2 }
 0x205   : > { %v1153_v50 = vadd.f32 %v1137_v48, %v1051_v39  ;;  %1102 = vst [vmem:[%s2702_s19 + $0xb8] sm:$0xff] %v1057_v49  ;;  %v1138_v51 = vmul.f32 %v1122_v47, %v1057_v49 }
 0x207   : > { %v1154_v52 = vadd.f32 %v1138_v51, %v1055_v45  ;;  %v1060_v53 = vpop.f32.mrb[24].mxu1 }
 0x208   : > { %v1061_v54 = vadd.f32 %v1060_v53, %v2687_v21  ;;  %v1062_v55 = vpop.f32.mrb[25].mxu1 }
 0x209   : > { %v1063_v57 = vadd.f32 %v1062_v55, %v2697_v22  ;;  %v1064_v58 = vpop.f32.mrb[26].mxu1  ;;  %v1164_v59 = vpack.c.bf16 %v1154_v52, %v1153_v50 }
 0x20a   : > { %1103 = vst [vmem:[%s2702_s19 + $0xc0] sm:$0xff] %v1061_v54  ;;  %v1065_v60 = vadd.f32 %v1064_v58, %v2687_v21  ;;  %v1066_v61 = vpop.f32.mrb[27].mxu1 }
 0x20b   : > { %1104 = vst [vmem:[%s2702_s19 + $0xc8] sm:$0xff] %v1063_v57  ;;  %v1139_v63 = vmul.f32 %v1123_v56, %v1063_v57  ;;  %v1067_v0 = vadd.f32 %v1066_v61, %v2697_v22  ;;  %1358 = vmatmul.mubr.bf16.gmra.mrb[52].mxu0 %v1164_v59 }
 0x20c   : > { %1105 = vst [vmem:[%s2702_s19 + $0xd0] sm:$0xff] %v1065_v60  ;;  %1367 = vmatprep.mubr.bf16.mxu0 %v2287_v2 }
 0x20d   : > { %v1155_v1 = vadd.f32 %v1139_v63, %v1061_v54  ;;  %1106 = vst [vmem:[%s2702_s19 + $0xd8] sm:$0xff] %v1067_v0  ;;  %v1140_v3 = vmul.f32 %v1124_v62, %v1067_v0 }
 0x20f   : > { %v1156_v4 = vadd.f32 %v1140_v3, %v1065_v60  ;;  %v1070_v5 = vpop.f32.mrb[28].mxu1 }
 0x210   : > { %v1071_v13 = vadd.f32 %v1070_v5, %v2687_v21  ;;  %v1072_v14 = vpop.f32.mrb[29].mxu1 }
 0x211   : > { %v1073_v7 = vadd.f32 %v1072_v14, %v2697_v22  ;;  %v1074_v8 = vpop.f32.mrb[30].mxu1  ;;  %v1165_v9 = vpack.c.bf16 %v1156_v4, %v1155_v1 }
 0x212   : > { %1107 = vst [vmem:[%s2702_s19 + $0xe0] sm:$0xff] %v1071_v13  ;;  %v1075_v11 = vadd.f32 %v1074_v8, %v2687_v21  ;;  %v1076_v15 = vpop.f32.mrb[31].mxu1  ;;  %v2210_v21 = vld [vmem:[%s2912_s8 + $0x28] sm:$0xff]  }
 0x213   : > { %1108 = vst [vmem:[%s2702_s19 + $0xe8] sm:$0xff] %v1073_v7  ;;  %v1141_v23 = vmul.f32 %v1125_v6, %v1073_v7  ;;  %v1077_v16 = vadd.f32 %v1076_v15, %v2697_v22  ;;  %1368 = vmatmul.mubr.bf16.gmra.mrb[56].mxu0 %v1165_v9  ;;  %2083 = vmatpush3.bf16.msra.mxu1 %v2210_v21  ;;  %v2211_v22 = vld [vmem:[%s2912_s8 + $0x70] sm:$0xff]  }
 0x214   : > { %1109 = vst [vmem:[%s2702_s19 + $0xf0] sm:$0xff] %v1075_v11  ;;  %1377 = vmatprep.mubr.bf16.mxu0 %v2287_v2  ;;  %2017 = vmatpush3.bf16.msra.mxu0 %v2210_v21  ;;  %v2212_v2 = vld [vmem:[%s2912_s8 + $0x30] sm:$0xff]  }
 0x215   : > { %v1157_v17 = vadd.f32 %v1141_v23, %v1071_v13  ;;  %1110 = vst [vmem:[%s2702_s19 + $0xf8] sm:$0xff] %v1077_v16  ;;  %v1142_v24 = vmul.f32 %v1126_v20, %v1077_v16  ;;  %2018 = vmatprep.subr.bf16.mxu0 %v2211_v22  ;;  %2076 = vmatprep.subr.bf16.mxu1 %v2211_v22 }
 0x217   : > { %v1158_v25 = vadd.f32 %v1142_v24, %v1075_v11  ;;  %2084 = vmatpush3.bf16.msra.mxu1 %v2212_v2 }
 0x218   : > { %2019 = vmatpush3.bf16.msra.mxu0 %v2212_v2  ;;  %2077 = vmatprep.subr.bf16.mxu1 %v2213_v27 }
 0x219   : > { %v1166_v26 = vpack.c.bf16 %v1158_v25, %v1157_v17  ;;  %2020 = vmatprep.subr.bf16.mxu0 %v2213_v27 }
 0x21b   : > { %1378 = vmatmul.mubr.bf16.gmra.mrb[60].mxu0 %v1166_v26  ;;  %2085 = vmatpush3.bf16.msra.mxu1 %v2214_v28 }
 0x21c   : > { %2021 = vmatpush3.bf16.msra.mxu0 %v2214_v28 }
 0x2b6   : > { %v1309_v18 = vpop.f32.mrb[32].mxu0 }
 0x2b7   : > { %v1310_v32 = vadd.f32 %v1309_v18, %v2820_v30  ;;  %v1311_v33 = vpop.f32.mrb[33].mxu0 }
 0x2b8   : > { %v1312_v19 = vadd.f32 %v1311_v33, %v2823_v31  ;;  %v1313_v34 = vpop.f32.mrb[34].mxu0 }
 0x2b9   : > { %v1314_v35 = vadd.f32 %v1313_v34, %v2820_v30  ;;  %v1315_v36 = vpop.f32.mrb[35].mxu0  ;;  %v1388_v38 = vmax.f32 %v1310_v32, 0.0 }
 0x2ba   : > { %v1316_v37 = vadd.f32 %v1315_v36, %v2823_v31  ;;  %v1389_v40 = vmax.f32 %v1312_v19, 0.0 }
 0x2bb   : > { %v1390_v39 = vmax.f32 %v1314_v35, 0.0 }
 0x2bc   : > { %v1391_v10 = vmax.f32 %v1316_v37, 0.0 }
 0x2bd   : > { %v1420_v41 = vpack.c.bf16 %v1390_v39, %v1388_v38 }
 0x2be   : > { %v1421_v42 = vpack.c.bf16 %v1391_v10, %v1389_v40  ;;  %v1319_v12 = vpop.f32.mrb[36].mxu0 }
 0x2bf   : > { %v1320_v43 = vadd.f32 %v1319_v12, %v2820_v30  ;;  %v1321_v44 = vpop.f32.mrb[37].mxu0 }
 0x2c0   : > { %v1322_v45 = vadd.f32 %v1321_v44, %v2823_v31  ;;  %v1323_v46 = vpop.f32.mrb[38].mxu0  ;;  %1603 = vmatprep.mubr.bf16.mxu0 %v1421_v42 }
 0x2c1   : > { %v1324_v47 = vadd.f32 %v1323_v46, %v2820_v30  ;;  %v1325_v48 = vpop.f32.mrb[39].mxu0  ;;  %1604 = vmatmul.mubr.bf16.vlgmr.msra.gmra.mrb[64].mxu0 %v1420_v41  ;;  %v1392_v50 = vmax.f32 %v1320_v43, 0.0 }
 0x2c2   : > { %v1326_v49 = vadd.f32 %v1325_v48, %v2823_v31  ;;  %v1393_v52 = vmax.f32 %v1322_v45, 0.0 }
 0x2c3   : > { %v1394_v51 = vmax.f32 %v1324_v47, 0.0 }
 0x2c4   : > { %v1395_v53 = vmax.f32 %v1326_v49, 0.0 }
 0x2c5   : > { %v1422_v54 = vpack.c.bf16 %v1394_v51, %v1392_v50 }
 0x2c6   : > { %v1423_v55 = vpack.c.bf16 %v1395_v53, %v1393_v52  ;;  %v1329_v56 = vpop.f32.mrb[40].mxu0 }
 0x2c7   : > { %v1330_v57 = vadd.f32 %v1329_v56, %v2820_v30  ;;  %v1331_v58 = vpop.f32.mrb[41].mxu0 }
 0x2c8   : > { %v1332_v59 = vadd.f32 %v1331_v58, %v2823_v31  ;;  %v1333_v60 = vpop.f32.mrb[42].mxu0  ;;  %1611 = vmatprep.mubr.bf16.mxu0 %v1423_v55 }
 0x2c9   : > { %v1334_v61 = vadd.f32 %v1333_v60, %v2820_v30  ;;  %v1335_v62 = vpop.f32.mrb[43].mxu0  ;;  %1612 = vmatmul.mubr.bf16.gmra.mrb[68].mxu0 %v1422_v54  ;;  %v1396_v0 = vmax.f32 %v1330_v57, 0.0 }
 0x2ca   : > { %v1336_v63 = vadd.f32 %v1335_v62, %v2823_v31  ;;  %v1397_v3 = vmax.f32 %v1332_v59, 0.0 }
 0x2cb   : > { %v1398_v1 = vmax.f32 %v1334_v61, 0.0 }
 0x2cc   : > { %v1399_v4 = vmax.f32 %v1336_v63, 0.0 }
 0x2cd   : > { %v1424_v5 = vpack.c.bf16 %v1398_v1, %v1396_v0 }
 0x2ce   : > { %v1425_v13 = vpack.c.bf16 %v1399_v4, %v1397_v3  ;;  %v1339_v14 = vpop.f32.mrb[44].mxu0 }
 0x2cf   : > { %v1340_v6 = vadd.f32 %v1339_v14, %v2820_v30  ;;  %v1341_v7 = vpop.f32.mrb[45].mxu0 }
 0x2d0   : > { %v1342_v8 = vadd.f32 %v1341_v7, %v2823_v31  ;;  %v1343_v9 = vpop.f32.mrb[46].mxu0  ;;  %1619 = vmatprep.mubr.bf16.mxu1 %v1425_v13 }
 0x2d1   : > { %v1344_v11 = vadd.f32 %v1343_v9, %v2820_v30  ;;  %v1345_v15 = vpop.f32.mrb[47].mxu0  ;;  %1620 = vmatmul.mubr.bf16.vlgmr.msra.gmra.mrb[32].mxu1 %v1424_v5  ;;  %v1400_v23 = vmax.f32 %v1340_v6, 0.0 }
 0x2d2   : > { %v1346_v20 = vadd.f32 %v1345_v15, %v2823_v31  ;;  %v1401_v17 = vmax.f32 %v1342_v8, 0.0 }
 0x2d3   : > { %v1402_v16 = vmax.f32 %v1344_v11, 0.0 }
 0x2d4   : > { %v1403_v24 = vmax.f32 %v1346_v20, 0.0 }
 0x2d5   : > { %v1426_v25 = vpack.c.bf16 %v1402_v16, %v1400_v23  ;;  %v2860_v16 = vld [vmem:[%s2913_s9] ss:$0 sm:$0xff] }
 0x2d6   : > { %v1427_v26 = vpack.c.bf16 %v1403_v24, %v1401_v17  ;;  %v1349_v21 = vpop.f32.mrb[48].mxu0 }
 0x2d7   : > { %v1350_v22 = vadd.f32 %v1349_v21, %v2820_v30  ;;  %v1351_v2 = vpop.f32.mrb[49].mxu0 }
 0x2d8   : > { %v1352_v27 = vadd.f32 %v1351_v2, %v2823_v31  ;;  %v1353_v28 = vpop.f32.mrb[50].mxu0  ;;  %1627 = vmatprep.mubr.bf16.mxu1 %v1427_v26 }
 0x2d9   : > { %v1354_v29 = vadd.f32 %v1353_v28, %v2820_v30  ;;  %v1355_v18 = vpop.f32.mrb[51].mxu0  ;;  %1628 = vmatmul.mubr.bf16.gmra.mrb[36].mxu1 %v1426_v25  ;;  %v1404_v33 = vmax.f32 %v1350_v22, 0.0 }
 0x2da   : > { %v1356_v32 = vadd.f32 %v1355_v18, %v2823_v31  ;;  %v1405_v34 = vmax.f32 %v1352_v27, 0.0 }
 0x2db   : > { %v1406_v19 = vmax.f32 %v1354_v29, 0.0 }
 0x2dc   : > { %v1407_v35 = vmax.f32 %v1356_v32, 0.0 }
 0x2dd   : > { %v1428_v36 = vpack.c.bf16 %v1406_v19, %v1404_v33 }
 0x2de   : > { %v1429_v37 = vpack.c.bf16 %v1407_v35, %v1405_v34  ;;  %v1359_v38 = vpop.f32.mrb[52].mxu0 }
 0x2df   : > { %v1360_v39 = vadd.f32 %v1359_v38, %v2820_v30  ;;  %v1361_v40 = vpop.f32.mrb[53].mxu0 }
 0x2e0   : > { %v1362_v10 = vadd.f32 %v1361_v40, %v2823_v31  ;;  %v1363_v41 = vpop.f32.mrb[54].mxu0  ;;  %1635 = vmatprep.mubr.bf16.mxu1 %v1429_v37 }
 0x2e1   : > { %v1364_v42 = vadd.f32 %v1363_v41, %v2820_v30  ;;  %v1365_v12 = vpop.f32.mrb[55].mxu0  ;;  %1636 = vmatmul.mubr.bf16.gmra.mrb[40].mxu1 %v1428_v36  ;;  %v1408_v44 = vmax.f32 %v1360_v39, 0.0 }
 0x2e2   : > { %v1366_v43 = vadd.f32 %v1365_v12, %v2823_v31  ;;  %v1409_v46 = vmax.f32 %v1362_v10, 0.0 }
 0x2e3   : > { %v1410_v45 = vmax.f32 %v1364_v42, 0.0 }
 0x2e4   : > { %v1411_v47 = vmax.f32 %v1366_v43, 0.0 }
 0x2e5   : > { %v1430_v48 = vpack.c.bf16 %v1410_v45, %v1408_v44 }
 0x2e6   : > { %v1431_v49 = vpack.c.bf16 %v1411_v47, %v1409_v46  ;;  %v1369_v50 = vpop.f32.mrb[56].mxu0 }
 0x2e7   : > { %v1370_v51 = vadd.f32 %v1369_v50, %v2820_v30  ;;  %v1371_v52 = vpop.f32.mrb[57].mxu0 }
 0x2e8   : > { %v1372_v53 = vadd.f32 %v1371_v52, %v2823_v31  ;;  %v1373_v54 = vpop.f32.mrb[58].mxu0  ;;  %1643 = vmatprep.mubr.bf16.mxu1 %v1431_v49 }
 0x2e9   : > { %v1374_v55 = vadd.f32 %v1373_v54, %v2820_v30  ;;  %v1375_v56 = vpop.f32.mrb[59].mxu0  ;;  %1644 = vmatmul.mubr.bf16.gmra.mrb[44].mxu1 %v1430_v48  ;;  %v1412_v58 = vmax.f32 %v1370_v51, 0.0 }
 0x2ea   : > { %v1376_v57 = vadd.f32 %v1375_v56, %v2823_v31  ;;  %v1413_v60 = vmax.f32 %v1372_v53, 0.0 }
 0x2eb   : > { %v1414_v59 = vmax.f32 %v1374_v55, 0.0 }
 0x2ec   : > { %v1415_v61 = vmax.f32 %v1376_v57, 0.0 }
 0x2ed   : > { %v1432_v62 = vpack.c.bf16 %v1414_v59, %v1412_v58 }
 0x2ee   : > { %v1433_v63 = vpack.c.bf16 %v1415_v61, %v1413_v60  ;;  %v1379_v0 = vpop.f32.mrb[60].mxu0 }
 0x2ef   : > { %v1380_v1 = vadd.f32 %v1379_v0, %v2820_v30  ;;  %v1381_v3 = vpop.f32.mrb[61].mxu0 }
 0x2f0   : > { %v1382_v4 = vadd.f32 %v1381_v3, %v2823_v31  ;;  %v1383_v5 = vpop.f32.mrb[62].mxu0  ;;  %1651 = vmatprep.mubr.bf16.mxu1 %v1433_v63 }
 0x2f1   : > { %v1384_v13 = vadd.f32 %v1383_v5, %v2820_v30  ;;  %v1385_v14 = vpop.f32.mrb[63].mxu0  ;;  %1652 = vmatmul.mubr.bf16.gmra.mrb[48].mxu1 %v1432_v62  ;;  %v1416_v7 = vmax.f32 %v1380_v1, 0.0 }
 0x2f2   : > { %v1386_v6 = vadd.f32 %v1385_v14, %v2823_v31  ;;  %v1417_v9 = vmax.f32 %v1382_v4, 0.0 }
 0x2f3   : > { %v1418_v8 = vmax.f32 %v1384_v13, 0.0 }
 0x2f4   : > { %v1419_v11 = vmax.f32 %v1386_v6, 0.0 }
 0x2f5   : > { %v1434_v15 = vpack.c.bf16 %v1418_v8, %v1416_v7 }
 0x2f6   : > { %v1435_v20 = vpack.c.bf16 %v1419_v11, %v1417_v9 }
 0x2f8   : > { %1659 = vmatprep.mubr.bf16.mxu1 %v1435_v20 }
 0x2f9   : > { %1660 = vmatmul.mubr.bf16.gmra.mrb[52].mxu1 %v1434_v15 }
 0x394   : > { %v2022_v23 = vpop.f32.mrb[64].mxu0 }
 0x395   : > { %v2023_v17 = vpop.f32.mrb[65].mxu0 }
 0x396   : > { %v2024_v30 = vadd.f32 %v2023_v17, %v2022_v23  ;;  %v2025_v24 = vpop.f32.mrb[66].mxu0 }
 0x397   : > { %v2026_v25 = vpop.f32.mrb[67].mxu0 }
 0x398   : > { %v1606_v31 = vadd.f32 %v2024_v30, %v2860_v16  ;;  %v2027_v26 = vadd.f32 %v2026_v25, %v2025_v24 }
 0x39a   : > { %v1987_v21 = vmul.f32 -1.442695, %v1606_v31  ;;  %v1609_v22 = vadd.f32 %v2027_v26, %v2860_v16 }
 0x39c   : > { %2215 = vpow2.f32 %v1987_v21  ;;  %v1988_v2 = vmul.f32 -1.442695, %v1609_v22  ;;  %v2028_v27 = vpop.f32.mrb[68].mxu0 }
 0x39d   : > { %v2029_v28 = vpop.f32.mrb[69].mxu0 }
 0x39e   : > { %2217 = vpow2.f32 %v1988_v2  ;;  %v2030_v29 = vadd.f32 %v2029_v28, %v2028_v27  ;;  %v2031_v18 = vpop.f32.mrb[70].mxu0 }
 0x39f   : > { %v2032_v32 = vpop.f32.mrb[71].mxu0 }
 0x3a0   : > { %v1614_v33 = vadd.f32 %v2030_v29, %v2860_v16  ;;  %v2033_v19 = vadd.f32 %v2032_v32, %v2031_v18 }
 0x3a2   : > { %v1989_v34 = vmul.f32 -1.442695, %v1614_v33  ;;  %v1617_v35 = vadd.f32 %v2033_v19, %v2860_v16 }
 0x3a4   : > { %2219 = vpow2.f32 %v1989_v34  ;;  %v1990_v36 = vmul.f32 -1.442695, %v1617_v35  ;;  %v2034_v37 = vpop.f32.mrb[32].mxu1 }
 0x3a5   : > { %v2035_v38 = vpop.f32.mrb[33].mxu1 }
 0x3a6   : > { %v2216_v39 = vpop.eup %2215  ;;  %2221 = vpow2.f32 %v1990_v36  ;;  %v2036_v40 = vadd.f32 %v2035_v38, %v2034_v37  ;;  %v2037_v10 = vpop.f32.mrb[34].mxu1 }
 0x3a7   : > { %v1716_v41 = vadd.f32 1.0, %v2216_v39  ;;  %v2038_v42 = vpop.f32.mrb[35].mxu1 }
 0x3a8   : > { %v2218_v12 = vpop.eup %2217  ;;  %v1622_v43 = vadd.f32 %v2036_v40, %v2860_v16  ;;  %v2039_v44 = vadd.f32 %v2038_v42, %v2037_v10 }
 0x3a9   : > { %2223 = vrcp.f32 %v1716_v41  ;;  %v1717_v45 = vadd.f32 1.0, %v2218_v12 }
 0x3aa   : > { %v1991_v46 = vmul.f32 -1.442695, %v1622_v43  ;;  %v1625_v47 = vadd.f32 %v2039_v44, %v2860_v16 }
 0x3ab   : > { %2225 = vrcp.f32 %v1717_v45 }
 0x3ac   : > { %2227 = vpow2.f32 %v1991_v46  ;;  %v1992_v48 = vmul.f32 -1.442695, %v1625_v47  ;;  %v2040_v49 = vpop.f32.mrb[36].mxu1 }
 0x3ad   : > { %v2041_v50 = vpop.f32.mrb[37].mxu1 }
 0x3ae   : > { %v2220_v51 = vpop.eup %2219  ;;  %2229 = vpow2.f32 %v1992_v48  ;;  %v2042_v52 = vadd.f32 %v2041_v50, %v2040_v49  ;;  %v2043_v53 = vpop.f32.mrb[38].mxu1 }
 0x3af   : > { %v1718_v54 = vadd.f32 1.0, %v2220_v51  ;;  %v2044_v55 = vpop.f32.mrb[39].mxu1 }
 0x3b0   : > { %v2222_v56 = vpop.eup %2221  ;;  %v1630_v57 = vadd.f32 %v2042_v52, %v2860_v16  ;;  %v2045_v58 = vadd.f32 %v2044_v55, %v2043_v53 }
 0x3b1   : > { %2231 = vrcp.f32 %v1718_v54  ;;  %v1719_v59 = vadd.f32 1.0, %v2222_v56 }
 0x3b2   : > { %v1993_v60 = vmul.f32 -1.442695, %v1630_v57  ;;  %v1633_v61 = vadd.f32 %v2045_v58, %v2860_v16 }
 0x3b3   : > { %v2224_v62 = vpop.eup %2223  ;;  %2233 = vrcp.f32 %v1719_v59 }
 0x3b4   : > { %1764 = vst [vmem:[%s2874_s18] sm:$0xff] %v2224_v62  ;;  %2235 = vpow2.f32 %v1993_v60  ;;  %v1994_v63 = vmul.f32 -1.442695, %v1633_v61  ;;  %v2046_v0 = vpop.f32.mrb[40].mxu1 }
 0x3b5   : > { %v2226_v1 = vpop.eup %2225  ;;  %v2047_v3 = vpop.f32.mrb[41].mxu1 }
 0x3b6   : > { %v2228_v4 = vpop.eup %2227  ;;  %1765 = vst [vmem:[%s2874_s18 + $0x8] sm:$0xff] %v2226_v1  ;;  %2237 = vpow2.f32 %v1994_v63  ;;  %v2048_v5 = vadd.f32 %v2047_v3, %v2046_v0  ;;  %v2049_v13 = vpop.f32.mrb[42].mxu1 }
 0x3b7   : > { %v1720_v14 = vadd.f32 1.0, %v2228_v4  ;;  %v2050_v6 = vpop.f32.mrb[43].mxu1 }
 0x3b8   : > { %v2230_v7 = vpop.eup %2229  ;;  %v1638_v8 = vadd.f32 %v2048_v5, %v2860_v16  ;;  %v2051_v9 = vadd.f32 %v2050_v6, %v2049_v13 }
 0x3b9   : > { %2239 = vrcp.f32 %v1720_v14  ;;  %v1721_v11 = vadd.f32 1.0, %v2230_v7 }
 0x3ba   : > { %v1995_v15 = vmul.f32 -1.442695, %v1638_v8  ;;  %v1641_v20 = vadd.f32 %v2051_v9, %v2860_v16 }
 0x3bb   : > { %v2232_v23 = vpop.eup %2231  ;;  %2241 = vrcp.f32 %v1721_v11 }
 0x3bc   : > { %1766 = vst [vmem:[%s2874_s18 + $0x10] sm:$0xff] %v2232_v23  ;;  %2243 = vpow2.f32 %v1995_v15  ;;  %v1996_v17 = vmul.f32 -1.442695, %v1641_v20  ;;  %v2052_v30 = vpop.f32.mrb[44].mxu1 }
 0x3bd   : > { %v2234_v24 = vpop.eup %2233  ;;  %v2053_v25 = vpop.f32.mrb[45].mxu1 }
 0x3be   : > { %v2236_v31 = vpop.eup %2235  ;;  %1767 = vst [vmem:[%s2874_s18 + $0x18] sm:$0xff] %v2234_v24  ;;  %2245 = vpow2.f32 %v1996_v17  ;;  %v2054_v26 = vadd.f32 %v2053_v25, %v2052_v30  ;;  %v2055_v21 = vpop.f32.mrb[46].mxu1 }
 0x3bf   : > { %v1722_v22 = vadd.f32 1.0, %v2236_v31  ;;  %v2056_v2 = vpop.f32.mrb[47].mxu1 }
 0x3c0   : > { %v2238_v27 = vpop.eup %2237  ;;  %v1646_v28 = vadd.f32 %v2054_v26, %v2860_v16  ;;  %v2057_v29 = vadd.f32 %v2056_v2, %v2055_v21 }
 0x3c1   : > { %2247 = vrcp.f32 %v1722_v22  ;;  %v1723_v18 = vadd.f32 1.0, %v2238_v27 }
 0x3c2   : > { %v1997_v32 = vmul.f32 -1.442695, %v1646_v28  ;;  %v1649_v33 = vadd.f32 %v2057_v29, %v2860_v16 }
 0x3c3   : > { %v2240_v19 = vpop.eup %2239  ;;  %2249 = vrcp.f32 %v1723_v18 }
 0x3c4   : > { %1768 = vst [vmem:[%s2874_s18 + $0x20] sm:$0xff] %v2240_v19  ;;  %2251 = vpow2.f32 %v1997_v32  ;;  %v1998_v34 = vmul.f32 -1.442695, %v1649_v33  ;;  %v2058_v35 = vpop.f32.mrb[48].mxu1 }
 0x3c5   : > { %v2242_v36 = vpop.eup %2241  ;;  %v2059_v37 = vpop.f32.mrb[49].mxu1 }
 0x3c6   : > { %v2244_v38 = vpop.eup %2243  ;;  %1769 = vst [vmem:[%s2874_s18 + $0x28] sm:$0xff] %v2242_v36  ;;  %2253 = vpow2.f32 %v1998_v34  ;;  %v2060_v39 = vadd.f32 %v2059_v37, %v2058_v35  ;;  %v2061_v40 = vpop.f32.mrb[50].mxu1 }
 0x3c7   : > { %v1724_v10 = vadd.f32 1.0, %v2244_v38  ;;  %v2062_v41 = vpop.f32.mrb[51].mxu1 }
 0x3c8   : > { %v2246_v42 = vpop.eup %2245  ;;  %v1654_v12 = vadd.f32 %v2060_v39, %v2860_v16  ;;  %v2063_v43 = vadd.f32 %v2062_v41, %v2061_v40 }
 0x3c9   : > { %2255 = vrcp.f32 %v1724_v10  ;;  %v1725_v44 = vadd.f32 1.0, %v2246_v42 }
 0x3ca   : > { %v1999_v45 = vmul.f32 -1.442695, %v1654_v12  ;;  %v1657_v46 = vadd.f32 %v2063_v43, %v2860_v16 }
 0x3cb   : > { %v2248_v47 = vpop.eup %2247  ;;  %2257 = vrcp.f32 %v1725_v44 }
 0x3cc   : > { %1770 = vst [vmem:[%s2874_s18 + $0x30] sm:$0xff] %v2248_v47  ;;  %2259 = vpow2.f32 %v1999_v45  ;;  %v2000_v48 = vmul.f32 -1.442695, %v1657_v46  ;;  %v2064_v49 = vpop.f32.mrb[52].mxu1 }
 0x3cd   : > { %v2250_v50 = vpop.eup %2249  ;;  %v2065_v51 = vpop.f32.mrb[53].mxu1 }
 0x3ce   : > { %v2252_v52 = vpop.eup %2251  ;;  %1771 = vst [vmem:[%s2874_s18 + $0x38] sm:$0xff] %v2250_v50  ;;  %2261 = vpow2.f32 %v2000_v48  ;;  %v2066_v53 = vadd.f32 %v2065_v51, %v2064_v49  ;;  %v2067_v54 = vpop.f32.mrb[54].mxu1 }
 0x3cf   : > { %v1726_v55 = vadd.f32 1.0, %v2252_v52  ;;  %v2068_v56 = vpop.f32.mrb[55].mxu1 }
 0x3d0   : > { %v2254_v57 = vpop.eup %2253  ;;  %v1662_v58 = vadd.f32 %v2066_v53, %v2860_v16  ;;  %v2069_v59 = vadd.f32 %v2068_v56, %v2067_v54 }
 0x3d1   : > { %2263 = vrcp.f32 %v1726_v55  ;;  %v1727_v60 = vadd.f32 1.0, %v2254_v57 }
 0x3d2   : > { %v2001_v61 = vmul.f32 -1.442695, %v1662_v58  ;;  %v1665_v62 = vadd.f32 %v2069_v59, %v2860_v16 }
 0x3d3   : > { %v2256_v63 = vpop.eup %2255  ;;  %2265 = vrcp.f32 %v1727_v60 }
 0x3d4   : > { %1772 = vst [vmem:[%s2874_s18 + $0x40] sm:$0xff] %v2256_v63  ;;  %2267 = vpow2.f32 %v2001_v61  ;;  %v2002_v0 = vmul.f32 -1.442695, %v1665_v62 }
 0x3d5   : > { %v2258_v1 = vpop.eup %2257 }
 0x3d6   : > { %v2260_v3 = vpop.eup %2259  ;;  %1773 = vst [vmem:[%s2874_s18 + $0x48] sm:$0xff] %v2258_v1  ;;  %2269 = vpow2.f32 %v2002_v0 }
 0x3d7   : > { %v1728_v4 = vadd.f32 1.0, %v2260_v3 }
 0x3d8   : > { %v2262_v5 = vpop.eup %2261 }
 0x3d9   : > { %2271 = vrcp.f32 %v1728_v4  ;;  %v1729_v13 = vadd.f32 1.0, %v2262_v5 }
 0x3db   : > { %v2264_v14 = vpop.eup %2263  ;;  %2273 = vrcp.f32 %v1729_v13 }
 0x3dc   : > { %1774 = vst [vmem:[%s2874_s18 + $0x50] sm:$0xff] %v2264_v14 }
 0x3dd   : > { %v2266_v16 = vpop.eup %2265 }
 0x3de   : > { %v2268_v6 = vpop.eup %2267  ;;  %1775 = vst [vmem:[%s2874_s18 + $0x58] sm:$0xff] %v2266_v16 }
 0x3df   : > { %v1730_v7 = vadd.f32 1.0, %v2268_v6 }
 0x3e0   : > { %v2270_v8 = vpop.eup %2269 }
 0x3e1   : > { %2275 = vrcp.f32 %v1730_v7  ;;  %v1731_v9 = vadd.f32 1.0, %v2270_v8 }
 0x3e3   : > { %v2272_v11 = vpop.eup %2271  ;;  %2277 = vrcp.f32 %v1731_v9 }
 0x3e4   : > { %1776 = vst [vmem:[%s2874_s18 + $0x60] sm:$0xff] %v2272_v11 }
 0x3e5   : > { %v2274_v15 = vpop.eup %2273 }
 0x3e6   : > { %1777 = vst [vmem:[%s2874_s18 + $0x68] sm:$0xff] %v2274_v15 }
 0x3eb   : > { %v2276_v20 = vpop.eup %2275 }
 0x3ec   : > { %1778 = vst [vmem:[%s2874_s18 + $0x70] sm:$0xff] %v2276_v20 }
 0x3ed   : > { %v2278_v23 = vpop.eup %2277 }
 0x3ee   : > { %1779 = vst [vmem:[%s2874_s18 + $0x78] sm:$0xff] %v2278_v23 }
 0x3ef PF: > { %s22_s17 = sadd.s32 1, %s2285_s17  }
 0x3f0   : > { %p19_p4 = scmp.ge.s32.totalorder %s22_s17, 4  }
 0x3f2   :  { %21 = sbr.rel (!%p19_p4) target bundleno = 1 (0x1), region = 105 }

</bundles_post_ra>
